<compile_context>
chip_gen: v7x
topology: tpu7x:2x2x1
jax: 0.10.0
libtpu: 0.0.40
codegen_flags: <defaults>
</compile_context>

<pallas_src>
import functools

import jax
import jax.numpy as jnp
from jax.experimental import pallas as pl
from jax.experimental.pallas import tpu as pltpu


def lstm_kernel(x_ref, wih_ref, whh_ref, b_ref, wout_ref, bout_ref,
                out_ref, xproj_ref, *, seq_len, batch_p, hidden_p):
    """Single-layer LSTM over the full sequence + final Linear, all in VMEM.

    x_ref     : (T*Bp, I)    time-major inputs, flattened over (t, batch)
    wih_ref   : (I, 4Hp)     input-to-hidden weights (gates packed i|f|g|o,
                             each gate zero-padded to Hp lanes)
    whh_ref   : (Hp, 4Hp)    hidden-to-hidden weights (rows >= H are zero)
    b_ref     : (1, 4Hp)     combined bias b_ih + b_hh (padded lanes zero)
    wout_ref  : (Hp, Op)     output linear weights (padded rows/cols zero)
    bout_ref  : (1, Op)      output linear bias
    out_ref   : (Bp, Op)     final prediction (lane-dense store)
    xproj_ref : (T*Bp, 4Hp)  VMEM scratch for the hoisted input projection
    """
    Bp, Hp = batch_p, hidden_p

    # (1) One MXU matmul for the whole sequence's input projection; bias is
    #     added once here instead of being re-broadcast every timestep.
    xproj_ref[...] = (
        jnp.dot(x_ref[...], wih_ref[...], preferred_element_type=jnp.float32)
        + b_ref[...]
    )

    # (2) Recurrent state stays vreg-resident: (Bp, Hp) = (8, 128) = 1 vreg each.
    h = jnp.zeros((Bp, Hp), jnp.float32)
    c = jnp.zeros((Bp, Hp), jnp.float32)

    # Static unroll: seq_len is small (8). For long sequences switch to
    # lax.fori_loop(..., unroll=k) carrying (h, c), indexing xproj via pl.ds.
    for t in range(seq_len):
        gates = xproj_ref[t * Bp:(t + 1) * Bp, :] + jnp.dot(
            h, whh_ref[...], preferred_element_type=jnp.float32)  # (Bp, 4Hp)

        # Each gate is a full 128-lane group at a multiple-of-128 offset:
        # whole-vreg extracts, full-width EUP sigmoid/tanh.
        i_g = jax.nn.sigmoid(gates[:, 0 * Hp:1 * Hp])
        f_g = jax.nn.sigmoid(gates[:, 1 * Hp:2 * Hp])
        g_g = jnp.tanh(gates[:, 2 * Hp:3 * Hp])
        o_g = jax.nn.sigmoid(gates[:, 3 * Hp:4 * Hp])

        c = f_g * c + i_g * g_g
        h = o_g * jnp.tanh(c)

    # Final Linear on hn[-1] (== h after the last step, since num_layers=1).
    out_ref[...] = (
        jnp.dot(h, wout_ref[...], preferred_element_type=jnp.float32)
        + bout_ref[...]
    ).astype(out_ref.dtype)


def _pad_gates_last(w, H, Hp):
    """w: (..., 4H), gate-packed (i|f|g|o) along last dim -> (..., 4Hp),
    zero-padding each gate block from H to Hp lanes."""
    lead = w.shape[:-1]
    w4 = w.reshape(*lead, 4, H)
    w4 = jnp.pad(w4, [(0, 0)] * len(lead) + [(0, 0), (0, Hp - H)])
    return w4.reshape(*lead, 4 * Hp)


def stock_price_lstm_forward(x, params):
    """x: (B, T, I) float32, batch_first like PyTorch. Returns (B, output_size)."""
    B, T, I = x.shape
    w_ih, w_hh, b_ih, b_hh, w_out, b_out = (
        params["w_ih"], params["w_hh"], params["b_ih"], params["b_hh"],
        params["w_out"], params["b_out"],
    )
    H = w_hh.shape[1]
    O = w_out.shape[0]

    # TPU-friendly padding (pure plumbing; padded lanes are exactly zero and
    # provably stay zero through the recurrence, so results are unchanged).
    SUB, LANE = 8, 128
    Bp = ((B + SUB - 1) // SUB) * SUB       # sublane-dense batch
    Hp = ((H + LANE - 1) // LANE) * LANE    # each gate -> full 128-lane group
    Op = ((O + LANE - 1) // LANE) * LANE    # lane-dense output store

    # Inputs: batch-pad, go time-major, flatten to (T*Bp, I) so the whole
    # input projection is a single matmul inside the kernel.
    x_p = jnp.pad(x, ((0, Bp - B), (0, 0), (0, 0)))
    x_tm = jnp.transpose(x_p, (1, 0, 2)).reshape(T * Bp, I)

    # Weights: transpose for right-multiplication, pad per-gate / per-dim.
    wih_t = _pad_gates_last(jnp.transpose(w_ih, (1, 0)), H, Hp)            # (I, 4Hp)
    whh_t = _pad_gates_last(jnp.transpose(w_hh, (1, 0)), H, Hp)            # (H, 4Hp)
    whh_t = jnp.pad(whh_t, ((0, Hp - H), (0, 0)))                          # (Hp, 4Hp)
    bias = _pad_gates_last((b_ih + b_hh).reshape(1, 4 * H), H, Hp)         # (1, 4Hp)
    wout_t = jnp.pad(jnp.transpose(w_out, (1, 0)),
                     ((0, Hp - H), (0, Op - O)))                           # (Hp, Op)
    bout = jnp.pad(b_out.reshape(1, O), ((0, 0), (0, Op - O)))             # (1, Op)

    kernel = functools.partial(lstm_kernel, seq_len=T, batch_p=Bp, hidden_p=Hp)
    vmem = pl.BlockSpec(memory_space=pltpu.MemorySpace.VMEM)

    out_p = pl.pallas_call(
        kernel,
        out_shape=jax.ShapeDtypeStruct((Bp, Op), jnp.float32),
        in_specs=[vmem] * 6,
        out_specs=vmem,
        scratch_shapes=[
            pltpu.VMEM((T * Bp, 4 * Hp), jnp.float32),   # hoisted x-projection slab
        ],
    )(x_tm, wih_t, whh_t, bias, wout_t, bout)

    return out_p[:B, :O]


def _reference_forward(x, params):
    """Pure-JAX reference mirroring torch.nn.LSTM + Linear (sanity check)."""
    w_ih, w_hh, b_ih, b_hh, w_out, b_out = (
        params["w_ih"], params["w_hh"], params["b_ih"], params["b_hh"],
        params["w_out"], params["b_out"],
    )
    B = x.shape[0]
    H = w_hh.shape[1]
    h = jnp.zeros((B, H), jnp.float32)
    c = jnp.zeros((B, H), jnp.float32)

    def step(carry, x_t):
        h, c = carry
        gates = x_t @ w_ih.T + h @ w_hh.T + b_ih + b_hh
        i_g = jax.nn.sigmoid(gates[:, 0 * H:1 * H])
        f_g = jax.nn.sigmoid(gates[:, 1 * H:2 * H])
        g_g = jnp.tanh(gates[:, 2 * H:3 * H])
        o_g = jax.nn.sigmoid(gates[:, 3 * H:4 * H])
        c = f_g * c + i_g * g_g
        h = o_g * jnp.tanh(c)
        return (h, c), None

    (h, _), _ = jax.lax.scan(step, (h, c), jnp.transpose(x, (1, 0, 2)))
    return h @ w_out.T + b_out


def init_params(key, input_size, hidden, output_size):
    """Deterministic init matching the shapes of nn.LSTM / nn.Linear (U(-k, k))."""
    ks = jax.random.split(key, 6)
    k_lstm = 1.0 / jnp.sqrt(hidden)
    k_lin = 1.0 / jnp.sqrt(hidden)
    u = lambda k, shape, scale: jax.random.uniform(
        k, shape, jnp.float32, minval=-scale, maxval=scale)
    return {
        "w_ih": u(ks[0], (4 * hidden, input_size), k_lstm),
        "w_hh": u(ks[1], (4 * hidden, hidden), k_lstm),
        "b_ih": u(ks[2], (4 * hidden,), k_lstm),
        "b_hh": u(ks[3], (4 * hidden,), k_lstm),
        "w_out": u(ks[4], (output_size, hidden), k_lin),
        "b_out": u(ks[5], (output_size,), k_lin),
    }


if __name__ == "__main__":
    # Shapes implied by StockPriceLSTM.forward: x (batch, seq, input_size=1),
    # hidden_layer_size=50 (module default), output_size=1.
    BATCH, SEQ, INPUT_SIZE, HIDDEN, OUTPUT_SIZE = 4, 8, 1, 50, 1

    key = jax.random.PRNGKey(0)
    k_x, k_p = jax.random.split(key)
    x = jax.random.normal(k_x, (BATCH, SEQ, INPUT_SIZE), jnp.float32)
    params = init_params(k_p, INPUT_SIZE, HIDDEN, OUTPUT_SIZE)

    out = stock_price_lstm_forward(x, params)
    out = jax.block_until_ready(out)

    ref = _reference_forward(x, params)
    assert out.shape == (BATCH, OUTPUT_SIZE), out.shape
    assert jnp.allclose(out, ref, atol=1e-4, rtol=1e-4), (out, ref)

    print("KERNEL_OK")
</pallas_src>

<mosaic_0001>
module attributes {stable_mosaic.version = 11 : i64} {
  func.func @lstm_kernel(%arg0: memref<64x1xf32, #tpu.memory_space<vmem>>, %arg1: memref<1x512xf32, #tpu.memory_space<vmem>>, %arg2: memref<128x512xf32, #tpu.memory_space<vmem>>, %arg3: memref<1x512xf32, #tpu.memory_space<vmem>>, %arg4: memref<128x128xf32, #tpu.memory_space<vmem>>, %arg5: memref<1x128xf32, #tpu.memory_space<vmem>>, %arg6: memref<8x128xf32, #tpu.memory_space<vmem>>, %arg7: memref<64x512xf32, #tpu.memory_space<vmem>>) attributes {dimension_semantics = [], scalar_prefetch = 0 : i64, scratch_operands = 1 : i64, tpu.core_type = #tpu.core_type<tc>} {
    %c0 = arith.constant 0 : index
    %c0_0 = arith.constant 0 : index
    %0 = vector.load %arg0[%c0, %c0_0] : memref<64x1xf32, #tpu.memory_space<vmem>>, vector<64x1xf32>
    %c0_1 = arith.constant 0 : index
    %c0_2 = arith.constant 0 : index
    %1 = vector.load %arg1[%c0_1, %c0_2] : memref<1x512xf32, #tpu.memory_space<vmem>>, vector<1x512xf32>
    %cst = arith.constant dense<0.000000e+00> : vector<64x512xf32>
    %2 = tpu.matmul %0, %1, %cst {dimension_numbers = #tpu.dot_dimension_numbers<[1], [0], [0], [1], [0, 0, 1, 1], [], []>} : vector<64x1xf32>, vector<1x512xf32>, vector<64x512xf32> -> vector<64x512xf32>
    %c0_3 = arith.constant 0 : index
    %c0_4 = arith.constant 0 : index
    %3 = vector.load %arg3[%c0_3, %c0_4] : memref<1x512xf32, #tpu.memory_space<vmem>>, vector<1x512xf32>
    %4 = vector.broadcast %3 : vector<1x512xf32> to vector<64x512xf32>
    %5 = arith.addf %2, %4 : vector<64x512xf32>
    %c0_5 = arith.constant 0 : index
    %c0_6 = arith.constant 0 : index
    %6 = vector.load %arg7[%c0_5, %c0_6] : memref<64x512xf32, #tpu.memory_space<vmem>>, vector<64x512xf32>
    tpu.vector_store %arg7[%c0_5, %c0_6], %5 {strides = array<i32>} : memref<64x512xf32, #tpu.memory_space<vmem>>, vector<64x512xf32>,
    %cst_7 = arith.constant 0.000000e+00 : f32
    %7 = vector.broadcast %cst_7 : f32 to vector<8x128xf32>
    %cst_8 = arith.constant 0.000000e+00 : f32
    %8 = vector.broadcast %cst_8 : f32 to vector<8x128xf32>
    %c0_9 = arith.constant 0 : index
    %c0_10 = arith.constant 0 : index
    %9 = vector.load %arg7[%c0_9, %c0_10] : memref<64x512xf32, #tpu.memory_space<vmem>>, vector<8x512xf32>
    %c0_11 = arith.constant 0 : index
    %c0_12 = arith.constant 0 : index
    %10 = vector.load %arg2[%c0_11, %c0_12] : memref<128x512xf32, #tpu.memory_space<vmem>>, vector<128x512xf32>
    %cst_13 = arith.constant dense<0.000000e+00> : vector<8x512xf32>
    %11 = tpu.matmul %7, %10, %cst_13 {dimension_numbers = #tpu.dot_dimension_numbers<[1], [0], [0], [1], [0, 0, 1, 1], [], []>} : vector<8x128xf32>, vector<128x512xf32>, vector<8x512xf32> -> vector<8x512xf32>
    %12 = arith.addf %9, %11 : vector<8x512xf32>
    %13 = vector.extract_strided_slice %12 {offsets = [0, 0], sizes = [8, 128], strides = [1, 1]} : vector<8x512xf32> to vector<8x128xf32>
    %14 = arith.negf %13 : vector<8x128xf32>
    %15 = math.exp %14 : vector<8x128xf32>
    %cst_14 = arith.constant 1.000000e+00 : f32
    %16 = vector.broadcast %cst_14 : f32 to vector<8x128xf32>
    %17 = arith.addf %16, %15 : vector<8x128xf32>
    %18 = arith.divf %16, %17 : vector<8x128xf32>
    %19 = vector.extract_strided_slice %12 {offsets = [0, 128], sizes = [8, 128], strides = [1, 1]} : vector<8x512xf32> to vector<8x128xf32>
    %20 = arith.negf %19 : vector<8x128xf32>
    %21 = math.exp %20 : vector<8x128xf32>
    %cst_15 = arith.constant 1.000000e+00 : f32
    %22 = vector.broadcast %cst_15 : f32 to vector<8x128xf32>
    %23 = arith.addf %22, %21 : vector<8x128xf32>
    %24 = arith.divf %22, %23 : vector<8x128xf32>
    %25 = vector.extract_strided_slice %12 {offsets = [0, 256], sizes = [8, 128], strides = [1, 1]} : vector<8x512xf32> to vector<8x128xf32>
    %26 = math.tanh %25 : vector<8x128xf32>
    %27 = vector.extract_strided_slice %12 {offsets = [0, 384], sizes = [8, 128], strides = [1, 1]} : vector<8x512xf32> to vector<8x128xf32>
    %28 = arith.negf %27 : vector<8x128xf32>
    %29 = math.exp %28 : vector<8x128xf32>
    %cst_16 = arith.constant 1.000000e+00 : f32
    %30 = vector.broadcast %cst_16 : f32 to vector<8x128xf32>
    %31 = arith.addf %30, %29 : vector<8x128xf32>
    %32 = arith.divf %30, %31 : vector<8x128xf32>
    %33 = arith.mulf %24, %8 : vector<8x128xf32>
    %34 = arith.mulf %18, %26 : vector<8x128xf32>
    %35 = arith.addf %33, %34 : vector<8x128xf32>
    %36 = math.tanh %35 : vector<8x128xf32>
    %37 = arith.mulf %32, %36 : vector<8x128xf32>
    %c8 = arith.constant 8 : index
    %c0_17 = arith.constant 0 : index
    %38 = vector.load %arg7[%c8, %c0_17] : memref<64x512xf32, #tpu.memory_space<vmem>>, vector<8x512xf32>
    %c0_18 = arith.constant 0 : index
    %c0_19 = arith.constant 0 : index
    %39 = vector.load %arg2[%c0_18, %c0_19] : memref<128x512xf32, #tpu.memory_space<vmem>>, vector<128x512xf32>
    %cst_20 = arith.constant dense<0.000000e+00> : vector<8x512xf32>
    %40 = tpu.matmul %37, %39, %cst_20 {dimension_numbers = #tpu.dot_dimension_numbers<[1], [0], [0], [1], [0, 0, 1, 1], [], []>} : vector<8x128xf32>, vector<128x512xf32>, vector<8x512xf32> -> vector<8x512xf32>
    %41 = arith.addf %38, %40 : vector<8x512xf32>
    %42 = vector.extract_strided_slice %41 {offsets = [0, 0], sizes = [8, 128], strides = [1, 1]} : vector<8x512xf32> to vector<8x128xf32>
    %43 = arith.negf %42 : vector<8x128xf32>
    %44 = math.exp %43 : vector<8x128xf32>
    %cst_21 = arith.constant 1.000000e+00 : f32
    %45 = vector.broadcast %cst_21 : f32 to vector<8x128xf32>
    %46 = arith.addf %45, %44 : vector<8x128xf32>
    %47 = arith.divf %45, %46 : vector<8x128xf32>
    %48 = vector.extract_strided_slice %41 {offsets = [0, 128], sizes = [8, 128], strides = [1, 1]} : vector<8x512xf32> to vector<8x128xf32>
    %49 = arith.negf %48 : vector<8x128xf32>
    %50 = math.exp %49 : vector<8x128xf32>
    %cst_22 = arith.constant 1.000000e+00 : f32
    %51 = vector.broadcast %cst_22 : f32 to vector<8x128xf32>
    %52 = arith.addf %51, %50 : vector<8x128xf32>
    %53 = arith.divf %51, %52 : vector<8x128xf32>
    %54 = vector.extract_strided_slice %41 {offsets = [0, 256], sizes = [8, 128], strides = [1, 1]} : vector<8x512xf32> to vector<8x128xf32>
    %55 = math.tanh %54 : vector<8x128xf32>
    %56 = vector.extract_strided_slice %41 {offsets = [0, 384], sizes = [8, 128], strides = [1, 1]} : vector<8x512xf32> to vector<8x128xf32>
    %57 = arith.negf %56 : vector<8x128xf32>
    %58 = math.exp %57 : vector<8x128xf32>
    %cst_23 = arith.constant 1.000000e+00 : f32
    %59 = vector.broadcast %cst_23 : f32 to vector<8x128xf32>
    %60 = arith.addf %59, %58 : vector<8x128xf32>
    %61 = arith.divf %59, %60 : vector<8x128xf32>
    %62 = arith.mulf %53, %35 : vector<8x128xf32>
    %63 = arith.mulf %47, %55 : vector<8x128xf32>
    %64 = arith.addf %62, %63 : vector<8x128xf32>
    %65 = math.tanh %64 : vector<8x128xf32>
    %66 = arith.mulf %61, %65 : vector<8x128xf32>
    %c16 = arith.constant 16 : index
    %c0_24 = arith.constant 0 : index
    %67 = vector.load %arg7[%c16, %c0_24] : memref<64x512xf32, #tpu.memory_space<vmem>>, vector<8x512xf32>
    %c0_25 = arith.constant 0 : index
    %c0_26 = arith.constant 0 : index
    %68 = vector.load %arg2[%c0_25, %c0_26] : memref<128x512xf32, #tpu.memory_space<vmem>>, vector<128x512xf32>
    %cst_27 = arith.constant dense<0.000000e+00> : vector<8x512xf32>
    %69 = tpu.matmul %66, %68, %cst_27 {dimension_numbers = #tpu.dot_dimension_numbers<[1], [0], [0], [1], [0, 0, 1, 1], [], []>} : vector<8x128xf32>, vector<128x512xf32>, vector<8x512xf32> -> vector<8x512xf32>
    %70 = arith.addf %67, %69 : vector<8x512xf32>
    %71 = vector.extract_strided_slice %70 {offsets = [0, 0], sizes = [8, 128], strides = [1, 1]} : vector<8x512xf32> to vector<8x128xf32>
    %72 = arith.negf %71 : vector<8x128xf32>
    %73 = math.exp %72 : vector<8x128xf32>
    %cst_28 = arith.constant 1.000000e+00 : f32
    %74 = vector.broadcast %cst_28 : f32 to vector<8x128xf32>
    %75 = arith.addf %74, %73 : vector<8x128xf32>
    %76 = arith.divf %74, %75 : vector<8x128xf32>
    %77 = vector.extract_strided_slice %70 {offsets = [0, 128], sizes = [8, 128], strides = [1, 1]} : vector<8x512xf32> to vector<8x128xf32>
    %78 = arith.negf %77 : vector<8x128xf32>
    %79 = math.exp %78 : vector<8x128xf32>
    %cst_29 = arith.constant 1.000000e+00 : f32
    %80 = vector.broadcast %cst_29 : f32 to vector<8x128xf32>
    %81 = arith.addf %80, %79 : vector<8x128xf32>
    %82 = arith.divf %80, %81 : vector<8x128xf32>
    %83 = vector.extract_strided_slice %70 {offsets = [0, 256], sizes = [8, 128], strides = [1, 1]} : vector<8x512xf32> to vector<8x128xf32>
    %84 = math.tanh %83 : vector<8x128xf32>
    %85 = vector.extract_strided_slice %70 {offsets = [0, 384], sizes = [8, 128], strides = [1, 1]} : vector<8x512xf32> to vector<8x128xf32>
    %86 = arith.negf %85 : vector<8x128xf32>
    %87 = math.exp %86 : vector<8x128xf32>
    %cst_30 = arith.constant 1.000000e+00 : f32
    %88 = vector.broadcast %cst_30 : f32 to vector<8x128xf32>
    %89 = arith.addf %88, %87 : vector<8x128xf32>
    %90 = arith.divf %88, %89 : vector<8x128xf32>
    %91 = arith.mulf %82, %64 : vector<8x128xf32>
    %92 = arith.mulf %76, %84 : vector<8x128xf32>
    %93 = arith.addf %91, %92 : vector<8x128xf32>
    %94 = math.tanh %93 : vector<8x128xf32>
    %95 = arith.mulf %90, %94 : vector<8x128xf32>
    %c24 = arith.constant 24 : index
    %c0_31 = arith.constant 0 : index
    %96 = vector.load %arg7[%c24, %c0_31] : memref<64x512xf32, #tpu.memory_space<vmem>>, vector<8x512xf32>
    %c0_32 = arith.constant 0 : index
    %c0_33 = arith.constant 0 : index
    %97 = vector.load %arg2[%c0_32, %c0_33] : memref<128x512xf32, #tpu.memory_space<vmem>>, vector<128x512xf32>
    %cst_34 = arith.constant dense<0.000000e+00> : vector<8x512xf32>
    %98 = tpu.matmul %95, %97, %cst_34 {dimension_numbers = #tpu.dot_dimension_numbers<[1], [0], [0], [1], [0, 0, 1, 1], [], []>} : vector<8x128xf32>, vector<128x512xf32>, vector<8x512xf32> -> vector<8x512xf32>
    %99 = arith.addf %96, %98 : vector<8x512xf32>
    %100 = vector.extract_strided_slice %99 {offsets = [0, 0], sizes = [8, 128], strides = [1, 1]} : vector<8x512xf32> to vector<8x128xf32>
    %101 = arith.negf %100 : vector<8x128xf32>
    %102 = math.exp %101 : vector<8x128xf32>
    %cst_35 = arith.constant 1.000000e+00 : f32
    %103 = vector.broadcast %cst_35 : f32 to vector<8x128xf32>
    %104 = arith.addf %103, %102 : vector<8x128xf32>
    %105 = arith.divf %103, %104 : vector<8x128xf32>
    %106 = vector.extract_strided_slice %99 {offsets = [0, 128], sizes = [8, 128], strides = [1, 1]} : vector<8x512xf32> to vector<8x128xf32>
    %107 = arith.negf %106 : vector<8x128xf32>
    %108 = math.exp %107 : vector<8x128xf32>
    %cst_36 = arith.constant 1.000000e+00 : f32
    %109 = vector.broadcast %cst_36 : f32 to vector<8x128xf32>
    %110 = arith.addf %109, %108 : vector<8x128xf32>
    %111 = arith.divf %109, %110 : vector<8x128xf32>
    %112 = vector.extract_strided_slice %99 {offsets = [0, 256], sizes = [8, 128], strides = [1, 1]} : vector<8x512xf32> to vector<8x128xf32>
    %113 = math.tanh %112 : vector<8x128xf32>
    %114 = vector.extract_strided_slice %99 {offsets = [0, 384], sizes = [8, 128], strides = [1, 1]} : vector<8x512xf32> to vector<8x128xf32>
    %115 = arith.negf %114 : vector<8x128xf32>
    %116 = math.exp %115 : vector<8x128xf32>
    %cst_37 = arith.constant 1.000000e+00 : f32
    %117 = vector.broadcast %cst_37 : f32 to vector<8x128xf32>
    %118 = arith.addf %117, %116 : vector<8x128xf32>
    %119 = arith.divf %117, %118 : vector<8x128xf32>
    %120 = arith.mulf %111, %93 : vector<8x128xf32>
    %121 = arith.mulf %105, %113 : vector<8x128xf32>
    %122 = arith.addf %120, %121 : vector<8x128xf32>
    %123 = math.tanh %122 : vector<8x128xf32>
    %124 = arith.mulf %119, %123 : vector<8x128xf32>
    %c32 = arith.constant 32 : index
    %c0_38 = arith.constant 0 : index
    %125 = vector.load %arg7[%c32, %c0_38] : memref<64x512xf32, #tpu.memory_space<vmem>>, vector<8x512xf32>
    %c0_39 = arith.constant 0 : index
    %c0_40 = arith.constant 0 : index
    %126 = vector.load %arg2[%c0_39, %c0_40] : memref<128x512xf32, #tpu.memory_space<vmem>>, vector<128x512xf32>
    %cst_41 = arith.constant dense<0.000000e+00> : vector<8x512xf32>
    %127 = tpu.matmul %124, %126, %cst_41 {dimension_numbers = #tpu.dot_dimension_numbers<[1], [0], [0], [1], [0, 0, 1, 1], [], []>} : vector<8x128xf32>, vector<128x512xf32>, vector<8x512xf32> -> vector<8x512xf32>
    %128 = arith.addf %125, %127 : vector<8x512xf32>
    %129 = vector.extract_strided_slice %128 {offsets = [0, 0], sizes = [8, 128], strides = [1, 1]} : vector<8x512xf32> to vector<8x128xf32>
    %130 = arith.negf %129 : vector<8x128xf32>
    %131 = math.exp %130 : vector<8x128xf32>
    %cst_42 = arith.constant 1.000000e+00 : f32
    %132 = vector.broadcast %cst_42 : f32 to vector<8x128xf32>
    %133 = arith.addf %132, %131 : vector<8x128xf32>
    %134 = arith.divf %132, %133 : vector<8x128xf32>
    %135 = vector.extract_strided_slice %128 {offsets = [0, 128], sizes = [8, 128], strides = [1, 1]} : vector<8x512xf32> to vector<8x128xf32>
    %136 = arith.negf %135 : vector<8x128xf32>
    %137 = math.exp %136 : vector<8x128xf32>
    %cst_43 = arith.constant 1.000000e+00 : f32
    %138 = vector.broadcast %cst_43 : f32 to vector<8x128xf32>
    %139 = arith.addf %138, %137 : vector<8x128xf32>
    %140 = arith.divf %138, %139 : vector<8x128xf32>
    %141 = vector.extract_strided_slice %128 {offsets = [0, 256], sizes = [8, 128], strides = [1, 1]} : vector<8x512xf32> to vector<8x128xf32>
    %142 = math.tanh %141 : vector<8x128xf32>
    %143 = vector.extract_strided_slice %128 {offsets = [0, 384], sizes = [8, 128], strides = [1, 1]} : vector<8x512xf32> to vector<8x128xf32>
    %144 = arith.negf %143 : vector<8x128xf32>
    %145 = math.exp %144 : vector<8x128xf32>
    %cst_44 = arith.constant 1.000000e+00 : f32
    %146 = vector.broadcast %cst_44 : f32 to vector<8x128xf32>
    %147 = arith.addf %146, %145 : vector<8x128xf32>
    %148 = arith.divf %146, %147 : vector<8x128xf32>
    %149 = arith.mulf %140, %122 : vector<8x128xf32>
    %150 = arith.mulf %134, %142 : vector<8x128xf32>
    %151 = arith.addf %149, %150 : vector<8x128xf32>
    %152 = math.tanh %151 : vector<8x128xf32>
    %153 = arith.mulf %148, %152 : vector<8x128xf32>
    %c40 = arith.constant 40 : index
    %c0_45 = arith.constant 0 : index
    %154 = vector.load %arg7[%c40, %c0_45] : memref<64x512xf32, #tpu.memory_space<vmem>>, vector<8x512xf32>
    %c0_46 = arith.constant 0 : index
    %c0_47 = arith.constant 0 : index
    %155 = vector.load %arg2[%c0_46, %c0_47] : memref<128x512xf32, #tpu.memory_space<vmem>>, vector<128x512xf32>
    %cst_48 = arith.constant dense<0.000000e+00> : vector<8x512xf32>
    %156 = tpu.matmul %153, %155, %cst_48 {dimension_numbers = #tpu.dot_dimension_numbers<[1], [0], [0], [1], [0, 0, 1, 1], [], []>} : vector<8x128xf32>, vector<128x512xf32>, vector<8x512xf32> -> vector<8x512xf32>
    %157 = arith.addf %154, %156 : vector<8x512xf32>
    %158 = vector.extract_strided_slice %157 {offsets = [0, 0], sizes = [8, 128], strides = [1, 1]} : vector<8x512xf32> to vector<8x128xf32>
    %159 = arith.negf %158 : vector<8x128xf32>
    %160 = math.exp %159 : vector<8x128xf32>
    %cst_49 = arith.constant 1.000000e+00 : f32
    %161 = vector.broadcast %cst_49 : f32 to vector<8x128xf32>
    %162 = arith.addf %161, %160 : vector<8x128xf32>
    %163 = arith.divf %161, %162 : vector<8x128xf32>
    %164 = vector.extract_strided_slice %157 {offsets = [0, 128], sizes = [8, 128], strides = [1, 1]} : vector<8x512xf32> to vector<8x128xf32>
    %165 = arith.negf %164 : vector<8x128xf32>
    %166 = math.exp %165 : vector<8x128xf32>
    %cst_50 = arith.constant 1.000000e+00 : f32
    %167 = vector.broadcast %cst_50 : f32 to vector<8x128xf32>
    %168 = arith.addf %167, %166 : vector<8x128xf32>
    %169 = arith.divf %167, %168 : vector<8x128xf32>
    %170 = vector.extract_strided_slice %157 {offsets = [0, 256], sizes = [8, 128], strides = [1, 1]} : vector<8x512xf32> to vector<8x128xf32>
    %171 = math.tanh %170 : vector<8x128xf32>
    %172 = vector.extract_strided_slice %157 {offsets = [0, 384], sizes = [8, 128], strides = [1, 1]} : vector<8x512xf32> to vector<8x128xf32>
    %173 = arith.negf %172 : vector<8x128xf32>
    %174 = math.exp %173 : vector<8x128xf32>
    %cst_51 = arith.constant 1.000000e+00 : f32
    %175 = vector.broadcast %cst_51 : f32 to vector<8x128xf32>
    %176 = arith.addf %175, %174 : vector<8x128xf32>
    %177 = arith.divf %175, %176 : vector<8x128xf32>
    %178 = arith.mulf %169, %151 : vector<8x128xf32>
    %179 = arith.mulf %163, %171 : vector<8x128xf32>
    %180 = arith.addf %178, %179 : vector<8x128xf32>
    %181 = math.tanh %180 : vector<8x128xf32>
    %182 = arith.mulf %177, %181 : vector<8x128xf32>
    %c48 = arith.constant 48 : index
    %c0_52 = arith.constant 0 : index
    %183 = vector.load %arg7[%c48, %c0_52] : memref<64x512xf32, #tpu.memory_space<vmem>>, vector<8x512xf32>
    %c0_53 = arith.constant 0 : index
    %c0_54 = arith.constant 0 : index
    %184 = vector.load %arg2[%c0_53, %c0_54] : memref<128x512xf32, #tpu.memory_space<vmem>>, vector<128x512xf32>
    %cst_55 = arith.constant dense<0.000000e+00> : vector<8x512xf32>
    %185 = tpu.matmul %182, %184, %cst_55 {dimension_numbers = #tpu.dot_dimension_numbers<[1], [0], [0], [1], [0, 0, 1, 1], [], []>} : vector<8x128xf32>, vector<128x512xf32>, vector<8x512xf32> -> vector<8x512xf32>
    %186 = arith.addf %183, %185 : vector<8x512xf32>
    %187 = vector.extract_strided_slice %186 {offsets = [0, 0], sizes = [8, 128], strides = [1, 1]} : vector<8x512xf32> to vector<8x128xf32>
    %188 = arith.negf %187 : vector<8x128xf32>
    %189 = math.exp %188 : vector<8x128xf32>
    %cst_56 = arith.constant 1.000000e+00 : f32
    %190 = vector.broadcast %cst_56 : f32 to vector<8x128xf32>
    %191 = arith.addf %190, %189 : vector<8x128xf32>
    %192 = arith.divf %190, %191 : vector<8x128xf32>
    %193 = vector.extract_strided_slice %186 {offsets = [0, 128], sizes = [8, 128], strides = [1, 1]} : vector<8x512xf32> to vector<8x128xf32>
    %194 = arith.negf %193 : vector<8x128xf32>
    %195 = math.exp %194 : vector<8x128xf32>
    %cst_57 = arith.constant 1.000000e+00 : f32
    %196 = vector.broadcast %cst_57 : f32 to vector<8x128xf32>
    %197 = arith.addf %196, %195 : vector<8x128xf32>
    %198 = arith.divf %196, %197 : vector<8x128xf32>
    %199 = vector.extract_strided_slice %186 {offsets = [0, 256], sizes = [8, 128], strides = [1, 1]} : vector<8x512xf32> to vector<8x128xf32>
    %200 = math.tanh %199 : vector<8x128xf32>
    %201 = vector.extract_strided_slice %186 {offsets = [0, 384], sizes = [8, 128], strides = [1, 1]} : vector<8x512xf32> to vector<8x128xf32>
    %202 = arith.negf %201 : vector<8x128xf32>
    %203 = math.exp %202 : vector<8x128xf32>
    %cst_58 = arith.constant 1.000000e+00 : f32
    %204 = vector.broadcast %cst_58 : f32 to vector<8x128xf32>
    %205 = arith.addf %204, %203 : vector<8x128xf32>
    %206 = arith.divf %204, %205 : vector<8x128xf32>
    %207 = arith.mulf %198, %180 : vector<8x128xf32>
    %208 = arith.mulf %192, %200 : vector<8x128xf32>
    %209 = arith.addf %207, %208 : vector<8x128xf32>
    %210 = math.tanh %209 : vector<8x128xf32>
    %211 = arith.mulf %206, %210 : vector<8x128xf32>
    %c56 = arith.constant 56 : index
    %c0_59 = arith.constant 0 : index
    %212 = vector.load %arg7[%c56, %c0_59] : memref<64x512xf32, #tpu.memory_space<vmem>>, vector<8x512xf32>
    %c0_60 = arith.constant 0 : index
    %c0_61 = arith.constant 0 : index
    %213 = vector.load %arg2[%c0_60, %c0_61] : memref<128x512xf32, #tpu.memory_space<vmem>>, vector<128x512xf32>
    %cst_62 = arith.constant dense<0.000000e+00> : vector<8x512xf32>
    %214 = tpu.matmul %211, %213, %cst_62 {dimension_numbers = #tpu.dot_dimension_numbers<[1], [0], [0], [1], [0, 0, 1, 1], [], []>} : vector<8x128xf32>, vector<128x512xf32>, vector<8x512xf32> -> vector<8x512xf32>
    %215 = arith.addf %212, %214 : vector<8x512xf32>
    %216 = vector.extract_strided_slice %215 {offsets = [0, 0], sizes = [8, 128], strides = [1, 1]} : vector<8x512xf32> to vector<8x128xf32>
    %217 = arith.negf %216 : vector<8x128xf32>
    %218 = math.exp %217 : vector<8x128xf32>
    %cst_63 = arith.constant 1.000000e+00 : f32
    %219 = vector.broadcast %cst_63 : f32 to vector<8x128xf32>
    %220 = arith.addf %219, %218 : vector<8x128xf32>
    %221 = arith.divf %219, %220 : vector<8x128xf32>
    %222 = vector.extract_strided_slice %215 {offsets = [0, 128], sizes = [8, 128], strides = [1, 1]} : vector<8x512xf32> to vector<8x128xf32>
    %223 = arith.negf %222 : vector<8x128xf32>
    %224 = math.exp %223 : vector<8x128xf32>
    %cst_64 = arith.constant 1.000000e+00 : f32
    %225 = vector.broadcast %cst_64 : f32 to vector<8x128xf32>
    %226 = arith.addf %225, %224 : vector<8x128xf32>
    %227 = arith.divf %225, %226 : vector<8x128xf32>
    %228 = vector.extract_strided_slice %215 {offsets = [0, 256], sizes = [8, 128], strides = [1, 1]} : vector<8x512xf32> to vector<8x128xf32>
    %229 = math.tanh %228 : vector<8x128xf32>
    %230 = vector.extract_strided_slice %215 {offsets = [0, 384], sizes = [8, 128], strides = [1, 1]} : vector<8x512xf32> to vector<8x128xf32>
    %231 = arith.negf %230 : vector<8x128xf32>
    %232 = math.exp %231 : vector<8x128xf32>
    %cst_65 = arith.constant 1.000000e+00 : f32
    %233 = vector.broadcast %cst_65 : f32 to vector<8x128xf32>
    %234 = arith.addf %233, %232 : vector<8x128xf32>
    %235 = arith.divf %233, %234 : vector<8x128xf32>
    %236 = arith.mulf %227, %209 : vector<8x128xf32>
    %237 = arith.mulf %221, %229 : vector<8x128xf32>
    %238 = arith.addf %236, %237 : vector<8x128xf32>
    %239 = math.tanh %238 : vector<8x128xf32>
    %240 = arith.mulf %235, %239 : vector<8x128xf32>
    %c0_66 = arith.constant 0 : index
    %c0_67 = arith.constant 0 : index
    %241 = vector.load %arg4[%c0_66, %c0_67] : memref<128x128xf32, #tpu.memory_space<vmem>>, vector<128x128xf32>
    %cst_68 = arith.constant dense<0.000000e+00> : vector<8x128xf32>
    %242 = tpu.matmul %240, %241, %cst_68 {dimension_numbers = #tpu.dot_dimension_numbers<[1], [0], [0], [1], [0, 0, 1, 1], [], []>} : vector<8x128xf32>, vector<128x128xf32>, vector<8x128xf32> -> vector<8x128xf32>
    %c0_69 = arith.constant 0 : index
    %c0_70 = arith.constant 0 : index
    %243 = vector.load %arg5[%c0_69, %c0_70] : memref<1x128xf32, #tpu.memory_space<vmem>>, vector<1x128xf32>
    %244 = vector.broadcast %243 : vector<1x128xf32> to vector<8x128xf32>
    %245 = arith.addf %242, %244 : vector<8x128xf32>
    %c0_71 = arith.constant 0 : index
    %c0_72 = arith.constant 0 : index
    %246 = vector.load %arg6[%c0_71, %c0_72] : memref<8x128xf32, #tpu.memory_space<vmem>>, vector<8x128xf32>
    tpu.vector_store %arg6[%c0_71, %c0_72], %245 {strides = array<i32>} : memref<8x128xf32, #tpu.memory_space<vmem>>, vector<8x128xf32>,
    return
  }
}

</mosaic_0001>

<bundles_post_ra>
// kernel: tpu_custom_call.1
= control target key start
LH: loop header
LB: loop body
LE: loop exit
PB: predicated region body
PF: predicated region fallthrough
CT: control target
= control target key end

     0   :  { %11 = vsyncpa [#allocation4], 0  ;;  %s3444_s0 = inlined_call_operand.vmem [shape: f32[64,1], index: 0, kind: input, shape index: {}]   ;;  %s3445_s1 = inlined_call_operand.vmem [shape: f32[1,512], index: 1, kind: input, shape index: {}]   ;;  %s3446_s2 = inlined_call_operand.hbm [shape: f32[128,512], index: 2, kind: input, shape index: {}]   ;;  %s3447_s3 = inlined_call_operand.vmem [shape: f32[1,512], index: 3, kind: input, shape index: {}]   ;;  %s3448_s4 = inlined_call_operand.hbm [shape: f32[128,128], index: 4, kind: input, shape index: {}]   ;;  %s3449_s5 = inlined_call_operand.vmem [shape: f32[1,128], index: 5, kind: input, shape index: {}]   ;;  %s3450_s6 = inlined_call_operand.hbm [shape: f32[8,128], index: 6, kind: output, shape index: {}]  }
   0x1   :  { %12 = vsyncpa [#allocation7], 0 }
   0x2   :  { %13 = vsyncpa [#allocation5], 0  ;;  %s2865_s21 = smov [#allocation3]   ;;  %s2793_s25 = scalar_lea.hbm %s3446_s2, 8192 }
   0x3   :  { %s23_s22 = sshll.u32 %s2865_s21, 4  ;;  %p2794_p0 = scmp.ne.s32.totalorder %s3446_s2, %s2793_s25  ;;  %s24_s22 = int_to_ptr.vmem [resolvable:$true] %s23_s22 }
   0x4   :  { %p2797_p1 = scmp.lt.u32.totalorder %s2793_s25, %s3446_s2 }
   0x6   :  { %p2799_p2 = pnand %p2797_p1, %p2794_p0 }
   0x8   :  { %2802 = shalt.err (!%p2799_p2)
}
   0x9   :  { %s2803_s30 = scalar_lea.vmem %s24_s22, 8192  ;;  %p2808_p4 = scmp.lt.s32.totalorder %s24_s22, %s24_s22 }
   0xa   :  { %p2804_p3 = scmp.ne.s32.totalorder %s24_s22, %s2803_s30  ;;  %p2809_p5 = scmp.lt.s32.totalorder %s2803_s30, %s2803_s30 }
   0xc   :  { %p2810_p6 = por %p2809_p5, %p2808_p4 }
   0xe   :  { %p2811_p7 = pnand %p2810_p6, %p2804_p3 }
  0x10   :  { %2814 = shalt.err (!%p2811_p7)
}
  0x11   :  { %s2866_s7 = smov 512   ;;  %s2867_s8 = smov 32  }
  0x12   :  { %29 = dma.hbm_to_vmem [thread:$0]  %s3446_s2, 8192, %s24_s22, [#allocation4], %s2866_s7, %s2866_s7, %s2867_s8  }
  0x13   :  { %s2868_s11 = smov [#allocation6]   ;;  %s2815_s15 = scalar_lea.hbm %s3448_s4, 2048 }
  0x14   :  { %s37_s12 = sshll.u32 %s2868_s11, 4  ;;  %p2816_p8 = scmp.ne.s32.totalorder %s3448_s4, %s2815_s15  ;;  %s38_s12 = int_to_ptr.vmem [resolvable:$true] %s37_s12 }
  0x15   :  { %p2819_p9 = scmp.lt.u32.totalorder %s2815_s15, %s3448_s4 }
  0x17   :  { %p2821_p10 = pnand %p2819_p9, %p2816_p8 }
  0x19   :  { %2824 = shalt.err (!%p2821_p10)
}
  0x1a   :  { %s2825_s20 = scalar_lea.vmem %s38_s12, 2048  ;;  %p2830_p12 = scmp.lt.s32.totalorder %s38_s12, %s38_s12 }
  0x1b   :  { %p2826_p11 = scmp.ne.s32.totalorder %s38_s12, %s2825_s20  ;;  %p2831_p13 = scmp.lt.s32.totalorder %s2825_s20, %s2825_s20 }
  0x1d   :  { %p2832_p0 = por %p2831_p13, %p2830_p12 }
  0x1f   :  { %p2833_p1 = pnand %p2832_p0, %p2826_p11 }
  0x21   :  { %2836 = shalt.err (!%p2833_p1)
}
  0x22   :  { %s2869_s2 = smov 128   ;;  %s2870_s21 = smov 8  }
  0x23   :  { %43 = dma.hbm_to_vmem [thread:$0]  %s3448_s4, 2048, %s38_s12, [#allocation7], %s2869_s2, %s2869_s2, %s2870_s21  }
  0x24   :  { %2859 = dma.done.wait [#allocation4], 8192  }
  0x25   :  { %2860 = vsyncadd [#allocation4], 4294959104 }
  0x26   :  { %2861 = dma.done.wait [#allocation7], 2048  }
  0x27   :  { %2862 = vsyncadd [#allocation7], 4294965248  ;;  %v63_v0 = vlaneseq  ;;  %v2871_v1 = vmov 0.0   ;;  %v60_v7 = vld [vmem:[%s3445_s1] sm:$0xf]  ;;  %vm125_vm0 = vcmask 1040384  }
  0x28   :  { %198 = vmatprep.mubr.f32.mxu0 %v2871_v1  ;;  %311 = vmatprep.mubr.f32.mxu1 %v2871_v1  ;;  %v52_v8 = vld [vmem:[%s3444_s0] sm:$0xff]  ;;  %v397_v11 = vld [vmem:[#allocation3 + $0x8] sm:$0xff]  ;;  %v399_v13 = vld [vmem:[#allocation3 + $0x18] sm:$0xff]  ;;  %vm100_vm1 = vcmask 7168   ;;  %vm2873_vm2 = vmmov 0   ;;  %s2874_s18 = smov [#allocation8]  }
  0x29   :  { %v2936_v2 = vshrl.u32 %v63_v0, 7  ;;  %v401_v12 = vld [vmem:[#allocation3 + $0x28] sm:$0xff]  ;;  %v403_v16 = vld [vmem:[#allocation3 + $0x38] sm:$0xff]  ;;  %v396_v17 = vld [vmem:[#allocation3] sm:$0xff]  ;;  %s1948_s19 = sshll.u32 %s2874_s18, 4  ;;  %s1949_s19 = int_to_ptr.vmem [resolvable:$true] %s1948_s19 }
  0x2a   :  { %v400_v18 = vld [vmem:[#allocation3 + $0x20] sm:$0xff]  ;;  %v2958_v19 = vpack.c.bf16 %v401_v12, %v397_v11  ;;  %v2960_v20 = vpack.c.bf16 %v403_v16, %v399_v13  ;;  %v398_v22 = vld [vmem:[#allocation3 + $0x10] sm:$0xff]  ;;  %v405_v25 = vld [vmem:[#allocation3 + $0x48] sm:$0xff]  ;;  %s2837_s20 = scalar_lea.vmem %s1949_s19, 128  ;;  %p2842_p3 = scmp.lt.s32.totalorder %s1949_s19, %s1949_s19 }
  0x2b   :  { %v69_v3 = vsub.s32 1, %v2936_v2  ;;  %v77_v4 = vsub.s32 3, %v2936_v2  ;;  %v65_v5 = vsub.s32 0, %v2936_v2  ;;  %v73_v6 = vsub.s32 2, %v2936_v2  ;;  %v402_v23 = vld [vmem:[#allocation3 + $0x30] sm:$0xff]  ;;  %v409_v26 = vld [vmem:[#allocation3 + $0x68] sm:$0xff]  ;;  %p2838_p2 = scmp.ne.s32.totalorder %s1949_s19, %s2837_s20  ;;  %p2843_p4 = scmp.lt.s32.totalorder %s2837_s20, %s2837_s20 }
  0x2c   :  { %v2962_v21 = vpack.c.bf16 %v400_v18, %v396_v17  ;;  %v2966_v24 = vpack.c.bf16 %v402_v23, %v398_v22  ;;  %v407_v27 = vld [vmem:[#allocation3 + $0x58] sm:$0xff]  ;;  %v404_v29 = vld [vmem:[#allocation3 + $0x40] sm:$0xff]  ;;  %v53_v31 = vld [vmem:[%s3444_s0 + $0x8] sm:$0xff]  ;;  %v2975_v32 = vpack.c.bf16 %v409_v26, %v405_v25 }
  0x2d   :  { %v91_v9 = vrot.slane %v60_v7, %v69_v3  ;;  %v99_v10 = vrot.slane %v60_v7, %v77_v4  ;;  %v87_v14 = vrot.slane %v60_v7, %v65_v5  ;;  %v95_v15 = vrot.slane %v60_v7, %v73_v6  ;;  %v411_v28 = vld [vmem:[#allocation3 + $0x78] sm:$0xff]  ;;  %v408_v30 = vld [vmem:[#allocation3 + $0x60] sm:$0xff]  ;;  %v406_v34 = vld [vmem:[#allocation3 + $0x50] sm:$0xff]  ;;  %p2844_p5 = por %p2843_p4, %p2842_p3 }
  0x2e   :  { %v2977_v33 = vpack.c.bf16 %v411_v28, %v407_v27  ;;  %v410_v35 = vld [vmem:[#allocation3 + $0x70] sm:$0xff]  ;;  %v2981_v36 = vpack.c.bf16 %v408_v30, %v404_v29  ;;  %v413_v38 = vld [vmem:[#allocation3 + $0x88] sm:$0xff]  ;;  %v415_v40 = vld [vmem:[#allocation3 + $0x98] sm:$0xff] }
  0x2f   :  { %1958 = vmatprep.subr.msk.mxu0 %vm125_vm0, %v91_v9  ;;  %1968 = vmatprep.subr.msk.mxu1 %vm125_vm0, %v99_v10  ;;  %v2983_v37 = vpack.c.bf16 %v410_v35, %v406_v34  ;;  %v417_v39 = vld [vmem:[#allocation3 + $0xa8] sm:$0xff]  ;;  %v419_v41 = vld [vmem:[#allocation3 + $0xb8] sm:$0xff]  ;;  %v412_v42 = vld [vmem:[#allocation3 + $0x80] sm:$0xff]  ;;  %p2845_p6 = pnand %p2844_p5, %p2838_p2 }
  0x30   :  { %1959 = vmatpush1.msk.msra.mxu0 %vm125_vm0, %v87_v14  ;;  %1969 = vmatpush1.msk.msra.mxu1 %vm125_vm0, %v95_v15  ;;  %v416_v43 = vld [vmem:[#allocation3 + $0xa0] sm:$0xff]  ;;  %v414_v44 = vld [vmem:[#allocation3 + $0x90] sm:$0xff]  ;;  %v2994_v47 = vpack.c.bf16 %v417_v39, %v413_v38  ;;  %v2996_v48 = vpack.c.bf16 %v419_v41, %v415_v40  ;;  %v421_v49 = vld [vmem:[#allocation3 + $0xc8] sm:$0xff] }
  0x31   :  { %1960 = vmatmul.mubr.msk.f32.vlgmr.msra.gmra.mrb[0].mxu0 %vm100_vm1, %v52_v8  ;;  %1970 = vmatmul.mubr.msk.f32.vlgmr.msra.gmra.mrb[0].mxu1 %vm100_vm1, %v52_v8  ;;  %v418_v45 = vld [vmem:[#allocation3 + $0xb0] sm:$0xff]  ;;  %v425_v50 = vld [vmem:[#allocation3 + $0xe8] sm:$0xff]  ;;  %v3000_v51 = vpack.c.bf16 %v416_v43, %v412_v42  ;;  %v423_v53 = vld [vmem:[#allocation3 + $0xd8] sm:$0xff] }
  0x32   :  { %2056 = vmatprep.subr.bf16.mxu0 %v2958_v19  ;;  %2088 = vmatprep.subr.bf16.mxu1 %v2960_v20  ;;  %v54_v46 = vld [vmem:[%s3444_s0 + $0x10] sm:$0xff]  ;;  %v3002_v52 = vpack.c.bf16 %v418_v45, %v414_v44  ;;  %v427_v54 = vld [vmem:[#allocation3 + $0xf8] sm:$0xff]  ;;  %v420_v55 = vld [vmem:[#allocation3 + $0xc0] sm:$0xff]  ;;  %v3013_v60 = vpack.c.bf16 %v425_v50, %v421_v49 }
  0x33   :  { %2058 = vmatpush1.bf16.msra.mxu0 %v2962_v21  ;;  %2090 = vmatpush1.bf16.msra.mxu1 %v2966_v24  ;;  %v424_v56 = vld [vmem:[#allocation3 + $0xe0] sm:$0xff]  ;;  %v422_v57 = vld [vmem:[#allocation3 + $0xd0] sm:$0xff]  ;;  %v55_v59 = vld [vmem:[%s3444_s0 + $0x18] sm:$0xff]  ;;  %v3015_v61 = vpack.c.bf16 %v427_v54, %v423_v53 }
  0x34   :  { %204 = vmatprep.mubr.f32.mxu0 %v2871_v1  ;;  %317 = vmatprep.mubr.f32.mxu1 %v2871_v1  ;;  %v426_v58 = vld [vmem:[#allocation3 + $0xf0] sm:$0xff]  ;;  %v429_v62 = vld [vmem:[#allocation3 + $0x108] sm:$0xff]  ;;  %v3019_v0 = vpack.c.bf16 %v424_v56, %v420_v55  ;;  %v431_v8 = vld [vmem:[#allocation3 + $0x118] sm:$0xff] }
  0x35   :  { %1961 = vmatmul.mubr.msk.f32.gmra.mrb[2].mxu0 %vm100_vm1, %v53_v31  ;;  %1971 = vmatmul.mubr.msk.f32.gmra.mrb[2].mxu1 %vm100_vm1, %v53_v31  ;;  %v433_v63 = vld [vmem:[#allocation3 + $0x128] sm:$0xff]  ;;  %v3021_v7 = vpack.c.bf16 %v426_v58, %v422_v57  ;;  %v435_v9 = vld [vmem:[#allocation3 + $0x138] sm:$0xff]  ;;  %v428_v10 = vld [vmem:[#allocation3 + $0x100] sm:$0xff] }
  0x36   :  { %2060 = vmatprep.subr.bf16.mxu0 %v2975_v32  ;;  %2092 = vmatprep.subr.bf16.mxu1 %v2977_v33  ;;  %v432_v11 = vld [vmem:[#allocation3 + $0x120] sm:$0xff]  ;;  %v430_v12 = vld [vmem:[#allocation3 + $0x110] sm:$0xff]  ;;  %v3032_v15 = vpack.c.bf16 %v433_v63, %v429_v62  ;;  %v3034_v16 = vpack.c.bf16 %v435_v9, %v431_v8  ;;  %v437_v17 = vld [vmem:[#allocation3 + $0x148] sm:$0xff] }
  0x37   :  { %2062 = vmatpush1.bf16.msra.mxu0 %v2981_v36  ;;  %2094 = vmatpush1.bf16.msra.mxu1 %v2983_v37  ;;  %v434_v13 = vld [vmem:[#allocation3 + $0x130] sm:$0xff]  ;;  %v56_v14 = vld [vmem:[%s3444_s0 + $0x20] sm:$0xff]  ;;  %v441_v18 = vld [vmem:[#allocation3 + $0x168] sm:$0xff]  ;;  %v3038_v22 = vpack.c.bf16 %v432_v11, %v428_v10 }
  0x38   :  { %210 = vmatprep.mubr.f32.mxu0 %v2871_v1  ;;  %323 = vmatprep.mubr.f32.mxu1 %v2871_v1  ;;  %v3040_v23 = vpack.c.bf16 %v434_v13, %v430_v12  ;;  %v439_v25 = vld [vmem:[#allocation3 + $0x158] sm:$0xff]  ;;  %v436_v27 = vld [vmem:[#allocation3 + $0x140] sm:$0xff]  ;;  %v438_v29 = vld [vmem:[#allocation3 + $0x150] sm:$0xff]  ;;  %v3051_v34 = vpack.c.bf16 %v441_v18, %v437_v17 }
  0x39   :  { %1962 = vmatmul.mubr.msk.f32.gmra.mrb[4].mxu0 %vm100_vm1, %v54_v46  ;;  %1972 = vmatmul.mubr.msk.f32.gmra.mrb[4].mxu1 %vm100_vm1, %v54_v46  ;;  %v443_v26 = vld [vmem:[#allocation3 + $0x178] sm:$0xff]  ;;  %v440_v28 = vld [vmem:[#allocation3 + $0x160] sm:$0xff]  ;;  %v442_v30 = vld [vmem:[#allocation3 + $0x170] sm:$0xff] }
  0x3a   :  { %2064 = vmatprep.subr.bf16.mxu0 %v2994_v47  ;;  %2096 = vmatprep.subr.bf16.mxu1 %v2996_v48  ;;  %v57_v31 = vld [vmem:[%s3444_s0 + $0x28] sm:$0xff]  ;;  %v3053_v35 = vpack.c.bf16 %v443_v26, %v439_v25  ;;  %v3057_v40 = vpack.c.bf16 %v440_v28, %v436_v27  ;;  %v3059_v41 = vpack.c.bf16 %v442_v30, %v438_v29  ;;  %v447_v42 = vld [vmem:[#allocation3 + $0x198] sm:$0xff]  ;;  %v444_v44 = vld [vmem:[#allocation3 + $0x180] sm:$0xff] }
  0x3b   :  { %2066 = vmatpush1.bf16.msra.mxu0 %v3000_v51  ;;  %2098 = vmatpush1.bf16.msra.mxu1 %v3002_v52  ;;  %v445_v38 = vld [vmem:[#allocation3 + $0x188] sm:$0xff]  ;;  %v451_v43 = vld [vmem:[#allocation3 + $0x1b8] sm:$0xff]  ;;  %v448_v45 = vld [vmem:[#allocation3 + $0x1a0] sm:$0xff] }
  0x3c   :  { %216 = vmatprep.mubr.f32.mxu0 %v2871_v1  ;;  %329 = vmatprep.mubr.f32.mxu1 %v2871_v1  ;;  %v449_v39 = vld [vmem:[#allocation3 + $0x1a8] sm:$0xff]  ;;  %v446_v46 = vld [vmem:[#allocation3 + $0x190] sm:$0xff]  ;;  %v3072_v54 = vpack.c.bf16 %v451_v43, %v447_v42  ;;  %v3076_v57 = vpack.c.bf16 %v448_v45, %v444_v44  ;;  %v459_v62 = vld [vmem:[#allocation3 + $0x1f8] sm:$0xff] }
  0x3d   :  { %1963 = vmatmul.mubr.msk.f32.gmra.mrb[6].mxu0 %vm100_vm1, %v55_v59  ;;  %1973 = vmatmul.mubr.msk.f32.gmra.mrb[6].mxu1 %vm100_vm1, %v55_v59  ;;  %v450_v49 = vld [vmem:[#allocation3 + $0x1b0] sm:$0xff]  ;;  %v3070_v53 = vpack.c.bf16 %v449_v39, %v445_v38  ;;  %v453_v55 = vld [vmem:[#allocation3 + $0x1c8] sm:$0xff]  ;;  %v455_v59 = vld [vmem:[#allocation3 + $0x1d8] sm:$0xff] }
  0x3e   :  { %2068 = vmatprep.subr.bf16.mxu0 %v3013_v60  ;;  %2100 = vmatprep.subr.bf16.mxu1 %v3015_v61  ;;  %v58_v50 = vld [vmem:[%s3444_s0 + $0x30] sm:$0xff]  ;;  %v457_v56 = vld [vmem:[#allocation3 + $0x1e8] sm:$0xff]  ;;  %v3078_v58 = vpack.c.bf16 %v450_v49, %v446_v46  ;;  %v452_v63 = vld [vmem:[#allocation3 + $0x1c0] sm:$0xff]  ;;  %v3091_v13 = vpack.c.bf16 %v459_v62, %v455_v59 }
  0x3f   :  { %2070 = vmatpush1.bf16.msra.mxu0 %v3019_v0  ;;  %2102 = vmatpush1.bf16.msra.mxu1 %v3021_v7  ;;  %v456_v8 = vld [vmem:[#allocation3 + $0x1e0] sm:$0xff]  ;;  %v454_v9 = vld [vmem:[#allocation3 + $0x1d0] sm:$0xff]  ;;  %v59_v11 = vld [vmem:[%s3444_s0 + $0x38] sm:$0xff]  ;;  %v3089_v12 = vpack.c.bf16 %v457_v56, %v453_v55 }
  0x40   :  { %222 = vmatprep.mubr.f32.mxu0 %v2871_v1  ;;  %335 = vmatprep.mubr.f32.mxu1 %v2871_v1  ;;  %v458_v10 = vld [vmem:[#allocation3 + $0x1f0] sm:$0xff]  ;;  %v61_v18 = vld [vmem:[%s3447_s3] sm:$0xf] }
  0x41   :  { %1964 = vmatmul.mubr.msk.f32.gmra.mrb[8].mxu0 %vm100_vm1, %v56_v14  ;;  %1974 = vmatmul.mubr.msk.f32.gmra.mrb[8].mxu1 %vm100_vm1, %v56_v14  ;;  %v3095_v14 = vpack.c.bf16 %v456_v8, %v452_v63  ;;  %v3097_v17 = vpack.c.bf16 %v458_v10, %v454_v9  ;;  %v3152_v25 = vrot.slane %v61_v18, %v65_v5 }
  0x42   :  { %2072 = vmatprep.subr.bf16.mxu0 %v3032_v15  ;;  %2104 = vmatprep.subr.bf16.mxu1 %v3034_v16  ;;  %v3156_v26 = vrot.slane %v61_v18, %v69_v3  ;;  %v3162_v42 = vrot.slane %v61_v18, %v77_v4  ;;  %v3167_v3 = vrot.slane %v61_v18, %v73_v6 }
  0x43   :  { %2074 = vmatpush1.bf16.msra.mxu0 %v3038_v22  ;;  %2106 = vmatpush1.bf16.msra.mxu1 %v3040_v23 }
  0x44   :  { %228 = vmatprep.mubr.f32.mxu0 %v2871_v1  ;;  %341 = vmatprep.mubr.f32.mxu1 %v2871_v1 }
  0x45   :  { %1965 = vmatmul.mubr.msk.f32.gmra.mrb[10].mxu0 %vm100_vm1, %v57_v31  ;;  %1975 = vmatmul.mubr.msk.f32.gmra.mrb[10].mxu1 %vm100_vm1, %v57_v31 }
  0x46   :  { %2076 = vmatprep.subr.bf16.mxu0 %v3051_v34  ;;  %2108 = vmatprep.subr.bf16.mxu1 %v3053_v35 }
  0x47   :  { %2078 = vmatpush1.bf16.msra.mxu0 %v3057_v40  ;;  %2110 = vmatpush1.bf16.msra.mxu1 %v3059_v41 }
  0x48   :  { %234 = vmatprep.mubr.f32.mxu0 %v2871_v1  ;;  %347 = vmatprep.mubr.f32.mxu1 %v2871_v1 }
  0x49   :  { %1966 = vmatmul.mubr.msk.f32.gmra.mrb[12].mxu0 %vm100_vm1, %v58_v50  ;;  %1976 = vmatmul.mubr.msk.f32.gmra.mrb[12].mxu1 %vm100_vm1, %v58_v50 }
  0x4a   :  { %2080 = vmatprep.subr.bf16.mxu0 %v3070_v53  ;;  %2112 = vmatprep.subr.bf16.mxu1 %v3072_v54 }
  0x4b   :  { %2082 = vmatpush1.bf16.msra.mxu0 %v3076_v57  ;;  %2114 = vmatpush1.bf16.msra.mxu1 %v3078_v58 }
  0x4c   :  { %240 = vmatprep.mubr.f32.mxu0 %v2871_v1  ;;  %353 = vmatprep.mubr.f32.mxu1 %v2871_v1 }
  0x4d   :  { %1967 = vmatmul.mubr.msk.f32.gmra.mrb[14].mxu0 %vm100_vm1, %v59_v11  ;;  %1977 = vmatmul.mubr.msk.f32.gmra.mrb[14].mxu1 %vm100_vm1, %v59_v11 }
  0x4e   :  { %2084 = vmatprep.subr.bf16.mxu0 %v3089_v12  ;;  %2116 = vmatprep.subr.bf16.mxu1 %v3091_v13 }
  0x4f   :  { %2086 = vmatpush1.bf16.msra.mxu0 %v3095_v14  ;;  %2118 = vmatpush1.bf16.msra.mxu1 %v3097_v17 }
  0x50   :  { %524 = vmatprep.mubr.f32.mxu0 %v2871_v1  ;;  %595 = vmatprep.mubr.f32.mxu1 %v2871_v1 }
  0x51   :  { %2120 = vmatprep.subr.bf16.mxu0 %v2958_v19  ;;  %2152 = vmatprep.subr.bf16.mxu1 %v2960_v20 }
  0x52   :  { %525 = vmatmul.mubr.f32.vlgmr.msra.gmra.mrb[0].mxu0 %v2871_v1  ;;  %596 = vmatmul.mubr.f32.vlgmr.msra.gmra.mrb[0].mxu1 %v2871_v1 }
  0x53   :  { %2122 = vmatpush1.bf16.msra.mxu0 %v2962_v21  ;;  %2154 = vmatpush1.bf16.msra.mxu1 %v2966_v24 }
  0x54   :  { %2124 = vmatprep.subr.bf16.mxu0 %v2975_v32  ;;  %2156 = vmatprep.subr.bf16.mxu1 %v2977_v33 }
  0x55   :  { %698 = vmatprep.mubr.f32.mxu0 %v2871_v1  ;;  %769 = vmatprep.mubr.f32.mxu1 %v2871_v1 }
  0x57   :  { %2126 = vmatpush1.bf16.msra.mxu0 %v2981_v36  ;;  %2158 = vmatpush1.bf16.msra.mxu1 %v2983_v37 }
  0x58   :  { %2128 = vmatprep.subr.bf16.mxu0 %v2994_v47  ;;  %2160 = vmatprep.subr.bf16.mxu1 %v2996_v48 }
  0x5b   :  { %2130 = vmatpush1.bf16.msra.mxu0 %v3000_v51  ;;  %2162 = vmatpush1.bf16.msra.mxu1 %v3002_v52 }
  0x5c   :  { %2132 = vmatprep.subr.bf16.mxu0 %v3013_v60  ;;  %2164 = vmatprep.subr.bf16.mxu1 %v3015_v61 }
  0x5f   :  { %2134 = vmatpush1.bf16.msra.mxu0 %v3019_v0  ;;  %2166 = vmatpush1.bf16.msra.mxu1 %v3021_v7 }
  0x60   :  { %2136 = vmatprep.subr.bf16.mxu0 %v3032_v15  ;;  %2168 = vmatprep.subr.bf16.mxu1 %v3034_v16 }
  0x63   :  { %2138 = vmatpush1.bf16.msra.mxu0 %v3038_v22  ;;  %2170 = vmatpush1.bf16.msra.mxu1 %v3040_v23 }
  0x64   :  { %2140 = vmatprep.subr.bf16.mxu0 %v3051_v34  ;;  %2172 = vmatprep.subr.bf16.mxu1 %v3053_v35 }
  0x67   :  { %2142 = vmatpush1.bf16.msra.mxu0 %v3057_v40  ;;  %2174 = vmatpush1.bf16.msra.mxu1 %v3059_v41 }
  0x68   :  { %2144 = vmatprep.subr.bf16.mxu0 %v3070_v53  ;;  %2176 = vmatprep.subr.bf16.mxu1 %v3072_v54 }
  0x6b   :  { %2146 = vmatpush1.bf16.msra.mxu0 %v3076_v57  ;;  %2178 = vmatpush1.bf16.msra.mxu1 %v3078_v58 }
  0x6c   :  { %2148 = vmatprep.subr.bf16.mxu0 %v3089_v12  ;;  %2180 = vmatprep.subr.bf16.mxu1 %v3091_v13 }
  0x6f   :  { %2150 = vmatpush1.bf16.msra.mxu0 %v3095_v14  ;;  %2182 = vmatpush1.bf16.msra.mxu1 %v3097_v17 }
  0x70   :  { %2184 = vmatprep.subr.bf16.mxu0 %v2958_v19  ;;  %2216 = vmatprep.subr.bf16.mxu1 %v2960_v20 }
 0x125   :  { %v526_v27 = vpop.f32.mrb[0].mxu0  ;;  %v597_v28 = vpop.f32.mrb[0].mxu1 }
 0x126   :  { %v2591_v29 = vadd.f32 %v526_v27, %v3152_v25  ;;  %v528_v30 = vpop.f32.mrb[1].mxu0  ;;  %v599_v31 = vpop.f32.mrb[1].mxu1  ;;  %v2607_v45 = vadd.f32 %v597_v28, %v3167_v3 }
 0x127   :  { %v2592_v38 = vadd.f32 %v528_v30, %v3156_v26  ;;  %v2608_v5 = vadd.f32 %v599_v31, %v3162_v42 }
 0x128   :  { %v1978_v39 = vmul.f32 -1.442695, %v2591_v29 }
 0x129   :  { %v1979_v43 = vmul.f32 -1.442695, %v2592_v38  ;;  %v1980_v44 = vmul.f32 -1.442695, %v2608_v5 }
 0x12a   :  { %2665 = vpow2.f32 %v1978_v39 }
 0x12b   :  { %2667 = vpow2.f32 %v1979_v43 }
 0x12c   :  { %2669 = vpow2.f32 %v1980_v44 }
 0x12d   :  { %2671 = vtanh.f32 %v2607_v45 }
 0x134   :  { %v2666_v46 = vpop.eup %2665 }
 0x135   :  { %v2668_v49 = vpop.eup %2667  ;;  %v609_v50 = vadd.f32 1.0, %v2666_v46 }
 0x136   :  { %v615_v55 = vadd.f32 1.0, %v2668_v49  ;;  %v2670_v4 = vpop.eup %2669 }
 0x137   :  { %2673 = vrcp.f32 %v609_v50  ;;  %v2672_v56 = vpop.eup %2671  ;;  %v622_v8 = vadd.f32 1.0, %v2670_v4 }
 0x138   :  { %2675 = vrcp.f32 %v615_v55 }
 0x139   :  { %2677 = vrcp.f32 %v622_v8 }
 0x141   :  { %v2674_v59 = vpop.eup %2673 }
 0x142   :  { %v2676_v62 = vpop.eup %2675  ;;  %v626_v63 = vmul.f32 %v2674_v59, %v2672_v56 }
 0x143   :  { %v625_v2 = vmul.f32 0.0, %v2676_v62  ;;  %v2678_v9 = vpop.eup %2677 }
 0x145   :  { %v3170_v6 = vadd.f32 %v626_v63, %v625_v2 }
 0x147   :  { %2679 = vtanh.f32 %v3170_v6 }
 0x151   :  { %v2680_v10 = vpop.eup %2679 }
 0x152   :  { %v629_v11 = vmul.f32 %v2680_v10, %v2678_v9 }
 0x154   :  { %699 = vmatmul.mubr.f32.vlgmr.msra.gmra.mrb[2].mxu0 %v629_v11  ;;  %770 = vmatmul.mubr.f32.vlgmr.msra.gmra.mrb[2].mxu1 %v629_v11 }
 0x155   :  { %2186 = vmatpush1.bf16.msra.mxu0 %v2962_v21  ;;  %2218 = vmatpush1.bf16.msra.mxu1 %v2966_v24 }
 0x156   :  { %2188 = vmatprep.subr.bf16.mxu0 %v2975_v32  ;;  %2220 = vmatprep.subr.bf16.mxu1 %v2977_v33 }
 0x157   :  { %872 = vmatprep.mubr.f32.mxu0 %v2871_v1  ;;  %943 = vmatprep.mubr.f32.mxu1 %v2871_v1 }
 0x159   :  { %2190 = vmatpush1.bf16.msra.mxu0 %v2981_v36  ;;  %2222 = vmatpush1.bf16.msra.mxu1 %v2983_v37 }
 0x15a   :  { %2192 = vmatprep.subr.bf16.mxu0 %v2994_v47  ;;  %2224 = vmatprep.subr.bf16.mxu1 %v2996_v48 }
 0x15d   :  { %2194 = vmatpush1.bf16.msra.mxu0 %v3000_v51  ;;  %2226 = vmatpush1.bf16.msra.mxu1 %v3002_v52 }
 0x15e   :  { %2196 = vmatprep.subr.bf16.mxu0 %v3013_v60  ;;  %2228 = vmatprep.subr.bf16.mxu1 %v3015_v61 }
 0x161   :  { %2198 = vmatpush1.bf16.msra.mxu0 %v3019_v0  ;;  %2230 = vmatpush1.bf16.msra.mxu1 %v3021_v7 }
 0x162   :  { %2200 = vmatprep.subr.bf16.mxu0 %v3032_v15  ;;  %2232 = vmatprep.subr.bf16.mxu1 %v3034_v16 }
 0x165   :  { %2202 = vmatpush1.bf16.msra.mxu0 %v3038_v22  ;;  %2234 = vmatpush1.bf16.msra.mxu1 %v3040_v23 }
 0x166   :  { %2204 = vmatprep.subr.bf16.mxu0 %v3051_v34  ;;  %2236 = vmatprep.subr.bf16.mxu1 %v3053_v35 }
 0x169   :  { %2206 = vmatpush1.bf16.msra.mxu0 %v3057_v40  ;;  %2238 = vmatpush1.bf16.msra.mxu1 %v3059_v41 }
 0x16a   :  { %2208 = vmatprep.subr.bf16.mxu0 %v3070_v53  ;;  %2240 = vmatprep.subr.bf16.mxu1 %v3072_v54 }
 0x16d   :  { %2210 = vmatpush1.bf16.msra.mxu0 %v3076_v57  ;;  %2242 = vmatpush1.bf16.msra.mxu1 %v3078_v58 }
 0x16e   :  { %2212 = vmatprep.subr.bf16.mxu0 %v3089_v12  ;;  %2244 = vmatprep.subr.bf16.mxu1 %v3091_v13 }
 0x171   :  { %2214 = vmatpush1.bf16.msra.mxu0 %v3095_v14  ;;  %2246 = vmatpush1.bf16.msra.mxu1 %v3097_v17 }
 0x172   :  { %2248 = vmatprep.subr.bf16.mxu0 %v2958_v19  ;;  %2280 = vmatprep.subr.bf16.mxu1 %v2960_v20 }
 0x227   :  { %v700_v18 = vpop.f32.mrb[2].mxu0  ;;  %v771_v27 = vpop.f32.mrb[2].mxu1 }
 0x228   :  { %v2593_v28 = vadd.f32 %v700_v18, %v3152_v25  ;;  %v702_v29 = vpop.f32.mrb[3].mxu0  ;;  %v773_v30 = vpop.f32.mrb[3].mxu1  ;;  %v2609_v44 = vadd.f32 %v771_v27, %v3167_v3 }
 0x229   :  { %v2594_v31 = vadd.f32 %v702_v29, %v3156_v26  ;;  %v2610_v43 = vadd.f32 %v773_v30, %v3162_v42 }
 0x22a   :  { %v1981_v38 = vmul.f32 -1.442695, %v2593_v28 }
 0x22b   :  { %v1982_v39 = vmul.f32 -1.442695, %v2594_v31  ;;  %v1983_v5 = vmul.f32 -1.442695, %v2610_v43 }
 0x22c   :  { %2681 = vpow2.f32 %v1981_v38 }
 0x22d   :  { %2683 = vpow2.f32 %v1982_v39 }
 0x22e   :  { %2685 = vpow2.f32 %v1983_v5 }
 0x22f   :  { %2687 = vtanh.f32 %v2609_v44 }
 0x236   :  { %v2682_v45 = vpop.eup %2681 }
 0x237   :  { %v2684_v46 = vpop.eup %2683  ;;  %v783_v49 = vadd.f32 1.0, %v2682_v45 }
 0x238   :  { %v789_v50 = vadd.f32 1.0, %v2684_v46  ;;  %v2686_v55 = vpop.eup %2685 }
 0x239   :  { %2689 = vrcp.f32 %v783_v49  ;;  %v2688_v4 = vpop.eup %2687  ;;  %v796_v63 = vadd.f32 1.0, %v2686_v55 }
 0x23a   :  { %2691 = vrcp.f32 %v789_v50 }
 0x23b   :  { %2693 = vrcp.f32 %v796_v63 }
 0x243   :  { %v2690_v56 = vpop.eup %2689 }
 0x244   :  { %v2692_v59 = vpop.eup %2691  ;;  %v800_v62 = vmul.f32 %v2690_v56, %v2688_v4 }
 0x245   :  { %v799_v8 = vmul.f32 %v2692_v59, %v3170_v6  ;;  %v2694_v9 = vpop.eup %2693 }
 0x247   :  { %v3212_v2 = vadd.f32 %v800_v62, %v799_v8 }
 0x249   :  { %2695 = vtanh.f32 %v3212_v2 }
 0x253   :  { %v2696_v10 = vpop.eup %2695 }
 0x254   :  { %v803_v11 = vmul.f32 %v2696_v10, %v2694_v9 }
 0x256   :  { %873 = vmatmul.mubr.f32.vlgmr.msra.gmra.mrb[4].mxu0 %v803_v11  ;;  %944 = vmatmul.mubr.f32.vlgmr.msra.gmra.mrb[4].mxu1 %v803_v11 }
 0x257   :  { %2250 = vmatpush1.bf16.msra.mxu0 %v2962_v21  ;;  %2282 = vmatpush1.bf16.msra.mxu1 %v2966_v24 }
 0x258   :  { %2252 = vmatprep.subr.bf16.mxu0 %v2975_v32  ;;  %2284 = vmatprep.subr.bf16.mxu1 %v2977_v33 }
 0x259   :  { %1046 = vmatprep.mubr.f32.mxu0 %v2871_v1  ;;  %1117 = vmatprep.mubr.f32.mxu1 %v2871_v1 }
 0x25b   :  { %2254 = vmatpush1.bf16.msra.mxu0 %v2981_v36  ;;  %2286 = vmatpush1.bf16.msra.mxu1 %v2983_v37 }
 0x25c   :  { %2256 = vmatprep.subr.bf16.mxu0 %v2994_v47  ;;  %2288 = vmatprep.subr.bf16.mxu1 %v2996_v48 }
 0x25f   :  { %2258 = vmatpush1.bf16.msra.mxu0 %v3000_v51  ;;  %2290 = vmatpush1.bf16.msra.mxu1 %v3002_v52 }
 0x260   :  { %2260 = vmatprep.subr.bf16.mxu0 %v3013_v60  ;;  %2292 = vmatprep.subr.bf16.mxu1 %v3015_v61 }
 0x263   :  { %2262 = vmatpush1.bf16.msra.mxu0 %v3019_v0  ;;  %2294 = vmatpush1.bf16.msra.mxu1 %v3021_v7 }
 0x264   :  { %2264 = vmatprep.subr.bf16.mxu0 %v3032_v15  ;;  %2296 = vmatprep.subr.bf16.mxu1 %v3034_v16 }
 0x267   :  { %2266 = vmatpush1.bf16.msra.mxu0 %v3038_v22  ;;  %2298 = vmatpush1.bf16.msra.mxu1 %v3040_v23 }
 0x268   :  { %2268 = vmatprep.subr.bf16.mxu0 %v3051_v34  ;;  %2300 = vmatprep.subr.bf16.mxu1 %v3053_v35 }
 0x26b   :  { %2270 = vmatpush1.bf16.msra.mxu0 %v3057_v40  ;;  %2302 = vmatpush1.bf16.msra.mxu1 %v3059_v41 }
 0x26c   :  { %2272 = vmatprep.subr.bf16.mxu0 %v3070_v53  ;;  %2304 = vmatprep.subr.bf16.mxu1 %v3072_v54 }
 0x26f   :  { %2274 = vmatpush1.bf16.msra.mxu0 %v3076_v57  ;;  %2306 = vmatpush1.bf16.msra.mxu1 %v3078_v58 }
 0x270   :  { %2276 = vmatprep.subr.bf16.mxu0 %v3089_v12  ;;  %2308 = vmatprep.subr.bf16.mxu1 %v3091_v13 }
 0x273   :  { %2278 = vmatpush1.bf16.msra.mxu0 %v3095_v14  ;;  %2310 = vmatpush1.bf16.msra.mxu1 %v3097_v17 }
 0x274   :  { %2312 = vmatprep.subr.bf16.mxu0 %v2958_v19  ;;  %2344 = vmatprep.subr.bf16.mxu1 %v2960_v20 }
 0x329   :  { %v874_v6 = vpop.f32.mrb[4].mxu0  ;;  %v945_v18 = vpop.f32.mrb[4].mxu1 }
 0x32a   :  { %v2595_v27 = vadd.f32 %v874_v6, %v3152_v25  ;;  %v876_v28 = vpop.f32.mrb[5].mxu0  ;;  %v947_v29 = vpop.f32.mrb[5].mxu1  ;;  %v2611_v5 = vadd.f32 %v945_v18, %v3167_v3 }
 0x32b   :  { %v2596_v30 = vadd.f32 %v876_v28, %v3156_v26  ;;  %v2612_v39 = vadd.f32 %v947_v29, %v3162_v42 }
 0x32c   :  { %v1984_v31 = vmul.f32 -1.442695, %v2595_v27 }
 0x32d   :  { %v1985_v38 = vmul.f32 -1.442695, %v2596_v30  ;;  %v1986_v43 = vmul.f32 -1.442695, %v2612_v39 }
 0x32e   :  { %2697 = vpow2.f32 %v1984_v31 }
 0x32f   :  { %2699 = vpow2.f32 %v1985_v38 }
 0x330   :  { %2701 = vpow2.f32 %v1986_v43 }
 0x331   :  { %2703 = vtanh.f32 %v2611_v5 }
 0x338   :  { %v2698_v44 = vpop.eup %2697 }
 0x339   :  { %v2700_v45 = vpop.eup %2699  ;;  %v957_v46 = vadd.f32 1.0, %v2698_v44 }
 0x33a   :  { %v963_v49 = vadd.f32 1.0, %v2700_v45  ;;  %v2702_v50 = vpop.eup %2701 }
 0x33b   :  { %2705 = vrcp.f32 %v957_v46  ;;  %v2704_v55 = vpop.eup %2703  ;;  %v970_v62 = vadd.f32 1.0, %v2702_v50 }
 0x33c   :  { %2707 = vrcp.f32 %v963_v49 }
 0x33d   :  { %2709 = vrcp.f32 %v970_v62 }
 0x345   :  { %v2706_v4 = vpop.eup %2705 }
 0x346   :  { %v2708_v56 = vpop.eup %2707  ;;  %v974_v59 = vmul.f32 %v2706_v4, %v2704_v55 }
 0x347   :  { %v973_v63 = vmul.f32 %v2708_v56, %v3212_v2  ;;  %v2710_v9 = vpop.eup %2709 }
 0x349   :  { %v3254_v8 = vadd.f32 %v974_v59, %v973_v63 }
 0x34b   :  { %2711 = vtanh.f32 %v3254_v8 }
 0x355   :  { %v2712_v10 = vpop.eup %2711 }
 0x356   :  { %v977_v11 = vmul.f32 %v2712_v10, %v2710_v9 }
 0x358   :  { %1047 = vmatmul.mubr.f32.vlgmr.msra.gmra.mrb[6].mxu0 %v977_v11  ;;  %1118 = vmatmul.mubr.f32.vlgmr.msra.gmra.mrb[6].mxu1 %v977_v11 }
 0x359   :  { %2314 = vmatpush1.bf16.msra.mxu0 %v2962_v21  ;;  %2346 = vmatpush1.bf16.msra.mxu1 %v2966_v24 }
 0x35a   :  { %2316 = vmatprep.subr.bf16.mxu0 %v2975_v32  ;;  %2348 = vmatprep.subr.bf16.mxu1 %v2977_v33 }
 0x35b   :  { %1220 = vmatprep.mubr.f32.mxu0 %v2871_v1  ;;  %1291 = vmatprep.mubr.f32.mxu1 %v2871_v1 }
 0x35d   :  { %2318 = vmatpush1.bf16.msra.mxu0 %v2981_v36  ;;  %2350 = vmatpush1.bf16.msra.mxu1 %v2983_v37 }
 0x35e   :  { %2320 = vmatprep.subr.bf16.mxu0 %v2994_v47  ;;  %2352 = vmatprep.subr.bf16.mxu1 %v2996_v48 }
 0x361   :  { %2322 = vmatpush1.bf16.msra.mxu0 %v3000_v51  ;;  %2354 = vmatpush1.bf16.msra.mxu1 %v3002_v52 }
 0x362   :  { %2324 = vmatprep.subr.bf16.mxu0 %v3013_v60  ;;  %2356 = vmatprep.subr.bf16.mxu1 %v3015_v61 }
 0x365   :  { %2326 = vmatpush1.bf16.msra.mxu0 %v3019_v0  ;;  %2358 = vmatpush1.bf16.msra.mxu1 %v3021_v7 }
 0x366   :  { %2328 = vmatprep.subr.bf16.mxu0 %v3032_v15  ;;  %2360 = vmatprep.subr.bf16.mxu1 %v3034_v16 }
 0x369   :  { %2330 = vmatpush1.bf16.msra.mxu0 %v3038_v22  ;;  %2362 = vmatpush1.bf16.msra.mxu1 %v3040_v23 }
 0x36a   :  { %2332 = vmatprep.subr.bf16.mxu0 %v3051_v34  ;;  %2364 = vmatprep.subr.bf16.mxu1 %v3053_v35 }
 0x36d   :  { %2334 = vmatpush1.bf16.msra.mxu0 %v3057_v40  ;;  %2366 = vmatpush1.bf16.msra.mxu1 %v3059_v41 }
 0x36e   :  { %2336 = vmatprep.subr.bf16.mxu0 %v3070_v53  ;;  %2368 = vmatprep.subr.bf16.mxu1 %v3072_v54 }
 0x371   :  { %2338 = vmatpush1.bf16.msra.mxu0 %v3076_v57  ;;  %2370 = vmatpush1.bf16.msra.mxu1 %v3078_v58 }
 0x372   :  { %2340 = vmatprep.subr.bf16.mxu0 %v3089_v12  ;;  %2372 = vmatprep.subr.bf16.mxu1 %v3091_v13 }
 0x375   :  { %2342 = vmatpush1.bf16.msra.mxu0 %v3095_v14  ;;  %2374 = vmatpush1.bf16.msra.mxu1 %v3097_v17 }
 0x376   :  { %2376 = vmatprep.subr.bf16.mxu0 %v2958_v19  ;;  %2408 = vmatprep.subr.bf16.mxu1 %v2960_v20 }
 0x42b   :  { %v1048_v2 = vpop.f32.mrb[6].mxu0  ;;  %v1119_v6 = vpop.f32.mrb[6].mxu1 }
 0x42c   :  { %v2597_v18 = vadd.f32 %v1048_v2, %v3152_v25  ;;  %v1050_v27 = vpop.f32.mrb[7].mxu0  ;;  %v1121_v28 = vpop.f32.mrb[7].mxu1  ;;  %v2613_v43 = vadd.f32 %v1119_v6, %v3167_v3 }
 0x42d   :  { %v2598_v29 = vadd.f32 %v1050_v27, %v3156_v26  ;;  %v2614_v38 = vadd.f32 %v1121_v28, %v3162_v42 }
 0x42e   :  { %v1987_v30 = vmul.f32 -1.442695, %v2597_v18 }
 0x42f   :  { %v1988_v31 = vmul.f32 -1.442695, %v2598_v29  ;;  %v1989_v39 = vmul.f32 -1.442695, %v2614_v38 }
 0x430   :  { %2713 = vpow2.f32 %v1987_v30 }
 0x431   :  { %2715 = vpow2.f32 %v1988_v31 }
 0x432   :  { %2717 = vpow2.f32 %v1989_v39 }
 0x433   :  { %2719 = vtanh.f32 %v2613_v43 }
 0x43a   :  { %v2714_v5 = vpop.eup %2713 }
 0x43b   :  { %v2716_v44 = vpop.eup %2715  ;;  %v1131_v45 = vadd.f32 1.0, %v2714_v5 }
 0x43c   :  { %v1137_v46 = vadd.f32 1.0, %v2716_v44  ;;  %v2718_v49 = vpop.eup %2717 }
 0x43d   :  { %2721 = vrcp.f32 %v1131_v45  ;;  %v2720_v50 = vpop.eup %2719  ;;  %v1144_v59 = vadd.f32 1.0, %v2718_v49 }
 0x43e   :  { %2723 = vrcp.f32 %v1137_v46 }
 0x43f   :  { %2725 = vrcp.f32 %v1144_v59 }
 0x447   :  { %v2722_v55 = vpop.eup %2721 }
 0x448   :  { %v2724_v4 = vpop.eup %2723  ;;  %v1148_v56 = vmul.f32 %v2722_v55, %v2720_v50 }
 0x449   :  { %v1147_v62 = vmul.f32 %v2724_v4, %v3254_v8  ;;  %v2726_v9 = vpop.eup %2725 }
 0x44b   :  { %v3296_v63 = vadd.f32 %v1148_v56, %v1147_v62 }
 0x44d   :  { %2727 = vtanh.f32 %v3296_v63 }
 0x457   :  { %v2728_v10 = vpop.eup %2727 }
 0x458   :  { %v1151_v11 = vmul.f32 %v2728_v10, %v2726_v9 }
 0x45a   :  { %1221 = vmatmul.mubr.f32.vlgmr.msra.gmra.mrb[8].mxu0 %v1151_v11  ;;  %1292 = vmatmul.mubr.f32.vlgmr.msra.gmra.mrb[8].mxu1 %v1151_v11 }
 0x45b   :  { %2378 = vmatpush1.bf16.msra.mxu0 %v2962_v21  ;;  %2410 = vmatpush1.bf16.msra.mxu1 %v2966_v24 }
 0x45c   :  { %2380 = vmatprep.subr.bf16.mxu0 %v2975_v32  ;;  %2412 = vmatprep.subr.bf16.mxu1 %v2977_v33 }
 0x45d   :  { %1394 = vmatprep.mubr.f32.mxu0 %v2871_v1  ;;  %1465 = vmatprep.mubr.f32.mxu1 %v2871_v1 }
 0x45f   :  { %2382 = vmatpush1.bf16.msra.mxu0 %v2981_v36  ;;  %2414 = vmatpush1.bf16.msra.mxu1 %v2983_v37 }
 0x460   :  { %2384 = vmatprep.subr.bf16.mxu0 %v2994_v47  ;;  %2416 = vmatprep.subr.bf16.mxu1 %v2996_v48 }
 0x463   :  { %2386 = vmatpush1.bf16.msra.mxu0 %v3000_v51  ;;  %2418 = vmatpush1.bf16.msra.mxu1 %v3002_v52 }
 0x464   :  { %2388 = vmatprep.subr.bf16.mxu0 %v3013_v60  ;;  %2420 = vmatprep.subr.bf16.mxu1 %v3015_v61 }
 0x467   :  { %2390 = vmatpush1.bf16.msra.mxu0 %v3019_v0  ;;  %2422 = vmatpush1.bf16.msra.mxu1 %v3021_v7 }
 0x468   :  { %2392 = vmatprep.subr.bf16.mxu0 %v3032_v15  ;;  %2424 = vmatprep.subr.bf16.mxu1 %v3034_v16 }
 0x46b   :  { %2394 = vmatpush1.bf16.msra.mxu0 %v3038_v22  ;;  %2426 = vmatpush1.bf16.msra.mxu1 %v3040_v23 }
 0x46c   :  { %2396 = vmatprep.subr.bf16.mxu0 %v3051_v34  ;;  %2428 = vmatprep.subr.bf16.mxu1 %v3053_v35 }
 0x46f   :  { %2398 = vmatpush1.bf16.msra.mxu0 %v3057_v40  ;;  %2430 = vmatpush1.bf16.msra.mxu1 %v3059_v41 }
 0x470   :  { %2400 = vmatprep.subr.bf16.mxu0 %v3070_v53  ;;  %2432 = vmatprep.subr.bf16.mxu1 %v3072_v54 }
 0x473   :  { %2402 = vmatpush1.bf16.msra.mxu0 %v3076_v57  ;;  %2434 = vmatpush1.bf16.msra.mxu1 %v3078_v58 }
 0x474   :  { %2404 = vmatprep.subr.bf16.mxu0 %v3089_v12  ;;  %2436 = vmatprep.subr.bf16.mxu1 %v3091_v13 }
 0x477   :  { %2406 = vmatpush1.bf16.msra.mxu0 %v3095_v14  ;;  %2438 = vmatpush1.bf16.msra.mxu1 %v3097_v17 }
 0x478   :  { %2440 = vmatprep.subr.bf16.mxu0 %v2958_v19  ;;  %2472 = vmatprep.subr.bf16.mxu1 %v2960_v20 }
 0x52d   :  { %v1222_v8 = vpop.f32.mrb[8].mxu0  ;;  %v1293_v2 = vpop.f32.mrb[8].mxu1 }
 0x52e   :  { %v2599_v6 = vadd.f32 %v1222_v8, %v3152_v25  ;;  %v1224_v18 = vpop.f32.mrb[9].mxu0  ;;  %v1295_v27 = vpop.f32.mrb[9].mxu1  ;;  %v2615_v39 = vadd.f32 %v1293_v2, %v3167_v3 }
 0x52f   :  { %v2600_v28 = vadd.f32 %v1224_v18, %v3156_v26  ;;  %v2616_v31 = vadd.f32 %v1295_v27, %v3162_v42 }
 0x530   :  { %v1990_v29 = vmul.f32 -1.442695, %v2599_v6 }
 0x531   :  { %v1991_v30 = vmul.f32 -1.442695, %v2600_v28  ;;  %v1992_v38 = vmul.f32 -1.442695, %v2616_v31 }
 0x532   :  { %2729 = vpow2.f32 %v1990_v29 }
 0x533   :  { %2731 = vpow2.f32 %v1991_v30 }
 0x534   :  { %2733 = vpow2.f32 %v1992_v38 }
 0x535   :  { %2735 = vtanh.f32 %v2615_v39 }
 0x53c   :  { %v2730_v43 = vpop.eup %2729 }
 0x53d   :  { %v2732_v5 = vpop.eup %2731  ;;  %v1305_v44 = vadd.f32 1.0, %v2730_v43 }
 0x53e   :  { %v1311_v45 = vadd.f32 1.0, %v2732_v5  ;;  %v2734_v46 = vpop.eup %2733 }
 0x53f   :  { %2737 = vrcp.f32 %v1305_v44  ;;  %v2736_v49 = vpop.eup %2735  ;;  %v1318_v56 = vadd.f32 1.0, %v2734_v46 }
 0x540   :  { %2739 = vrcp.f32 %v1311_v45 }
 0x541   :  { %2741 = vrcp.f32 %v1318_v56 }
 0x549   :  { %v2738_v50 = vpop.eup %2737 }
 0x54a   :  { %v2740_v55 = vpop.eup %2739  ;;  %v1322_v4 = vmul.f32 %v2738_v50, %v2736_v49 }
 0x54b   :  { %v1321_v59 = vmul.f32 %v2740_v55, %v3296_v63  ;;  %v2742_v9 = vpop.eup %2741 }
 0x54d   :  { %v3338_v62 = vadd.f32 %v1322_v4, %v1321_v59 }
 0x54f   :  { %2743 = vtanh.f32 %v3338_v62 }
 0x559   :  { %v2744_v10 = vpop.eup %2743 }
 0x55a   :  { %v1325_v11 = vmul.f32 %v2744_v10, %v2742_v9  ;;  %v1851_v10 = vld [vmem:[#allocation6 + $0x18] sm:$0xff] }
 0x55c   :  { %1395 = vmatmul.mubr.f32.vlgmr.msra.gmra.mrb[10].mxu0 %v1325_v11  ;;  %1466 = vmatmul.mubr.f32.vlgmr.msra.gmra.mrb[10].mxu1 %v1325_v11 }
 0x55d   :  { %2442 = vmatpush1.bf16.msra.mxu0 %v2962_v21  ;;  %2474 = vmatpush1.bf16.msra.mxu1 %v2966_v24 }
 0x55e   :  { %2444 = vmatprep.subr.bf16.mxu0 %v2975_v32  ;;  %2476 = vmatprep.subr.bf16.mxu1 %v2977_v33 }
 0x55f   :  { %1568 = vmatprep.mubr.f32.mxu0 %v2871_v1  ;;  %1639 = vmatprep.mubr.f32.mxu1 %v2871_v1 }
 0x561   :  { %2446 = vmatpush1.bf16.msra.mxu0 %v2981_v36  ;;  %2478 = vmatpush1.bf16.msra.mxu1 %v2983_v37 }
 0x562   :  { %2448 = vmatprep.subr.bf16.mxu0 %v2994_v47  ;;  %2480 = vmatprep.subr.bf16.mxu1 %v2996_v48 }
 0x565   :  { %2450 = vmatpush1.bf16.msra.mxu0 %v3000_v51  ;;  %2482 = vmatpush1.bf16.msra.mxu1 %v3002_v52 }
 0x566   :  { %2452 = vmatprep.subr.bf16.mxu0 %v3013_v60  ;;  %2484 = vmatprep.subr.bf16.mxu1 %v3015_v61 }
 0x569   :  { %2454 = vmatpush1.bf16.msra.mxu0 %v3019_v0  ;;  %2486 = vmatpush1.bf16.msra.mxu1 %v3021_v7 }
 0x56a   :  { %2456 = vmatprep.subr.bf16.mxu0 %v3032_v15  ;;  %2488 = vmatprep.subr.bf16.mxu1 %v3034_v16 }
 0x56d   :  { %2458 = vmatpush1.bf16.msra.mxu0 %v3038_v22  ;;  %2490 = vmatpush1.bf16.msra.mxu1 %v3040_v23 }
 0x56e   :  { %2460 = vmatprep.subr.bf16.mxu0 %v3051_v34  ;;  %2492 = vmatprep.subr.bf16.mxu1 %v3053_v35 }
 0x571   :  { %2462 = vmatpush1.bf16.msra.mxu0 %v3057_v40  ;;  %2494 = vmatpush1.bf16.msra.mxu1 %v3059_v41 }
 0x572   :  { %2464 = vmatprep.subr.bf16.mxu0 %v3070_v53  ;;  %2496 = vmatprep.subr.bf16.mxu1 %v3072_v54 }
 0x575   :  { %2466 = vmatpush1.bf16.msra.mxu0 %v3076_v57  ;;  %2498 = vmatpush1.bf16.msra.mxu1 %v3078_v58 }
 0x576   :  { %2468 = vmatprep.subr.bf16.mxu0 %v3089_v12  ;;  %2500 = vmatprep.subr.bf16.mxu1 %v3091_v13 }
 0x579   :  { %2470 = vmatpush1.bf16.msra.mxu0 %v3095_v14  ;;  %2502 = vmatpush1.bf16.msra.mxu1 %v3097_v17 }
 0x57a   :  { %2504 = vmatprep.subr.bf16.mxu0 %v2958_v19  ;;  %2536 = vmatprep.subr.bf16.mxu1 %v2960_v20 }
 0x62f   :  { %v1396_v63 = vpop.f32.mrb[10].mxu0  ;;  %v1467_v8 = vpop.f32.mrb[10].mxu1 }
 0x630   :  { %v2601_v2 = vadd.f32 %v1396_v63, %v3152_v25  ;;  %v1398_v6 = vpop.f32.mrb[11].mxu0  ;;  %v1469_v18 = vpop.f32.mrb[11].mxu1  ;;  %v2617_v38 = vadd.f32 %v1467_v8, %v3167_v3  ;;  %v1852_v63 = vld [vmem:[#allocation6 + $0x20] sm:$0xff]  ;;  %v1853_v8 = vld [vmem:[#allocation6 + $0x28] sm:$0xff] }
 0x631   :  { %v2602_v27 = vadd.f32 %v1398_v6, %v3156_v26  ;;  %v2618_v30 = vadd.f32 %v1469_v18, %v3162_v42  ;;  %v1854_v6 = vld [vmem:[#allocation6 + $0x30] sm:$0xff]  ;;  %v1855_v18 = vld [vmem:[#allocation6 + $0x38] sm:$0xff] }
 0x632   :  { %v1993_v28 = vmul.f32 -1.442695, %v2601_v2  ;;  %v2574_v2 = vpack.c.bf16 %v1853_v8, %v1852_v63 }
 0x633   :  { %v1994_v29 = vmul.f32 -1.442695, %v2602_v27  ;;  %v1995_v31 = vmul.f32 -1.442695, %v2618_v30  ;;  %v2577_v27 = vpack.c.bf16 %v1855_v18, %v1854_v6 }
 0x634   :  { %2745 = vpow2.f32 %v1993_v28  ;;  %v1856_v28 = vld [vmem:[#allocation6 + $0x40] sm:$0xff] }
 0x635   :  { %2747 = vpow2.f32 %v1994_v29  ;;  %v1857_v29 = vld [vmem:[#allocation6 + $0x48] sm:$0xff] }
 0x636   :  { %2749 = vpow2.f32 %v1995_v31  ;;  %v2580_v30 = vpack.c.bf16 %v1857_v29, %v1856_v28  ;;  %v1858_v31 = vld [vmem:[#allocation6 + $0x50] sm:$0xff] }
 0x637   :  { %2751 = vtanh.f32 %v2617_v38  ;;  %v1859_v38 = vld [vmem:[#allocation6 + $0x58] sm:$0xff] }
 0x63e   :  { %v2746_v19 = vpop.eup %2745 }
 0x63f   :  { %v2748_v39 = vpop.eup %2747  ;;  %v1479_v20 = vadd.f32 1.0, %v2746_v19  ;;  %v1860_v19 = vld [vmem:[#allocation6 + $0x60] sm:$0xff] }
 0x640   :  { %v1485_v43 = vadd.f32 1.0, %v2748_v39  ;;  %v2750_v5 = vpop.eup %2749  ;;  %v2583_v39 = vpack.c.bf16 %v1859_v38, %v1858_v31 }
 0x641   :  { %2753 = vrcp.f32 %v1479_v20  ;;  %v2752_v44 = vpop.eup %2751  ;;  %v1492_v50 = vadd.f32 1.0, %v2750_v5  ;;  %v1861_v20 = vld [vmem:[#allocation6 + $0x68] sm:$0xff]  ;;  %v1862_v5 = vld [vmem:[#allocation6 + $0x70] sm:$0xff] }
 0x642   :  { %2755 = vrcp.f32 %v1485_v43  ;;  %v2586_v43 = vpack.c.bf16 %v1861_v20, %v1860_v19 }
 0x643   :  { %2757 = vrcp.f32 %v1492_v50 }
 0x64b   :  { %v2754_v45 = vpop.eup %2753 }
 0x64c   :  { %v2756_v46 = vpop.eup %2755  ;;  %v1496_v49 = vmul.f32 %v2754_v45, %v2752_v44  ;;  %v1863_v44 = vld [vmem:[#allocation6 + $0x78] sm:$0xff] }
 0x64d   :  { %v1495_v55 = vmul.f32 %v2756_v46, %v3338_v62  ;;  %v2758_v56 = vpop.eup %2757  ;;  %v1850_v62 = vld [vmem:[#allocation6 + $0x10] sm:$0xff]  ;;  %v2589_v45 = vpack.c.bf16 %v1863_v44, %v1862_v5 }
 0x64e   :  { %v2571_v11 = vpack.c.bf16 %v1851_v10, %v1850_v62 }
 0x64f   :  { %v3380_v4 = vadd.f32 %v1496_v49, %v1495_v55 }
 0x651   :  { %2759 = vtanh.f32 %v3380_v4 }
 0x65b   :  { %v2760_v59 = vpop.eup %2759 }
 0x65c   :  { %v1499_v9 = vmul.f32 %v2760_v59, %v2758_v56 }
 0x65e   :  { %1569 = vmatmul.mubr.f32.vlgmr.msra.gmra.mrb[12].mxu0 %v1499_v9  ;;  %1640 = vmatmul.mubr.f32.vlgmr.msra.gmra.mrb[12].mxu1 %v1499_v9 }
 0x65f   :  { %2506 = vmatpush1.bf16.msra.mxu0 %v2962_v21  ;;  %2538 = vmatpush1.bf16.msra.mxu1 %v2966_v24 }
 0x660   :  { %2508 = vmatprep.subr.bf16.mxu0 %v2975_v32  ;;  %2540 = vmatprep.subr.bf16.mxu1 %v2977_v33 }
 0x661   :  { %1742 = vmatprep.mubr.f32.mxu0 %v2871_v1  ;;  %1813 = vmatprep.mubr.f32.mxu1 %v2871_v1 }
 0x663   :  { %2510 = vmatpush1.bf16.msra.mxu0 %v2981_v36  ;;  %2542 = vmatpush1.bf16.msra.mxu1 %v2983_v37 }
 0x664   :  { %2512 = vmatprep.subr.bf16.mxu0 %v2994_v47  ;;  %2544 = vmatprep.subr.bf16.mxu1 %v2996_v48 }
 0x667   :  { %2514 = vmatpush1.bf16.msra.mxu0 %v3000_v51  ;;  %2546 = vmatpush1.bf16.msra.mxu1 %v3002_v52 }
 0x668   :  { %2516 = vmatprep.subr.bf16.mxu0 %v3013_v60  ;;  %2548 = vmatprep.subr.bf16.mxu1 %v3015_v61 }
 0x66b   :  { %2518 = vmatpush1.bf16.msra.mxu0 %v3019_v0  ;;  %2550 = vmatpush1.bf16.msra.mxu1 %v3021_v7 }
 0x66c   :  { %2520 = vmatprep.subr.bf16.mxu0 %v3032_v15  ;;  %2552 = vmatprep.subr.bf16.mxu1 %v3034_v16 }
 0x66f   :  { %2522 = vmatpush1.bf16.msra.mxu0 %v3038_v22  ;;  %2554 = vmatpush1.bf16.msra.mxu1 %v3040_v23 }
 0x670   :  { %2524 = vmatprep.subr.bf16.mxu0 %v3051_v34  ;;  %2556 = vmatprep.subr.bf16.mxu1 %v3053_v35 }
 0x673   :  { %2526 = vmatpush1.bf16.msra.mxu0 %v3057_v40  ;;  %2558 = vmatpush1.bf16.msra.mxu1 %v3059_v41 }
 0x674   :  { %2528 = vmatprep.subr.bf16.mxu0 %v3070_v53  ;;  %2560 = vmatprep.subr.bf16.mxu1 %v3072_v54 }
 0x677   :  { %2530 = vmatpush1.bf16.msra.mxu0 %v3076_v57  ;;  %2562 = vmatpush1.bf16.msra.mxu1 %v3078_v58 }
 0x678   :  { %2532 = vmatprep.subr.bf16.mxu0 %v3089_v12  ;;  %2564 = vmatprep.subr.bf16.mxu1 %v3091_v13  ;;  %v1848_v12 = vld [vmem:[#allocation6] sm:$0xff]  ;;  %v1849_v13 = vld [vmem:[#allocation6 + $0x8] sm:$0xff] }
 0x67b   :  { %2534 = vmatpush1.bf16.msra.mxu0 %v3095_v14  ;;  %2566 = vmatpush1.bf16.msra.mxu1 %v3097_v17  ;;  %v2568_v14 = vpack.c.bf16 %v1849_v13, %v1848_v12  ;;  %v2872_v17 = vmov 0.0|0.0  }
 0x67c   :  { %2567 = vmatprep.subr.bf16.mxu0 %v2872_v17 }
 0x731   :  { %v1570_v21 = vpop.f32.mrb[12].mxu0  ;;  %v1641_v24 = vpop.f32.mrb[12].mxu1 }
 0x732   :  { %v2603_v32 = vadd.f32 %v1570_v21, %v3152_v25  ;;  %v1572_v33 = vpop.f32.mrb[13].mxu0  ;;  %v1643_v36 = vpop.f32.mrb[13].mxu1  ;;  %v2619_v60 = vadd.f32 %v1641_v24, %v3167_v3 }
 0x733   :  { %v2604_v37 = vadd.f32 %v1572_v33, %v3156_v26  ;;  %v2620_v51 = vadd.f32 %v1643_v36, %v3162_v42 }
 0x734   :  { %v1996_v47 = vmul.f32 -1.442695, %v2603_v32 }
 0x735   :  { %v1997_v48 = vmul.f32 -1.442695, %v2604_v37  ;;  %v1998_v52 = vmul.f32 -1.442695, %v2620_v51 }
 0x736   :  { %2761 = vpow2.f32 %v1996_v47 }
 0x737   :  { %2763 = vpow2.f32 %v1997_v48 }
 0x738   :  { %2765 = vpow2.f32 %v1998_v52 }
 0x739   :  { %2767 = vtanh.f32 %v2619_v60 }
 0x740   :  { %v2762_v61 = vpop.eup %2761 }
 0x741   :  { %v2764_v0 = vpop.eup %2763  ;;  %v1653_v7 = vadd.f32 1.0, %v2762_v61 }
 0x742   :  { %v1659_v15 = vadd.f32 1.0, %v2764_v0  ;;  %v2766_v16 = vpop.eup %2765 }
 0x743   :  { %2769 = vrcp.f32 %v1653_v7  ;;  %v2768_v22 = vpop.eup %2767  ;;  %v1666_v40 = vadd.f32 1.0, %v2766_v16  ;;  %v2002_v7 = vld [vmem:[%s3449_s5] ss:$0 sm:$0xff] }
 0x744   :  { %2771 = vrcp.f32 %v1659_v15 }
 0x745   :  { %2773 = vrcp.f32 %v1666_v40 }
 0x74d   :  { %v2770_v23 = vpop.eup %2769 }
 0x74e   :  { %v2772_v34 = vpop.eup %2771  ;;  %v1670_v35 = vmul.f32 %v2770_v23, %v2768_v22 }
 0x74f   :  { %v1669_v41 = vmul.f32 %v2772_v34, %v3380_v4  ;;  %v2774_v54 = vpop.eup %2773 }
 0x751   :  { %v3420_v53 = vadd.f32 %v1670_v35, %v1669_v41 }
 0x753   :  { %2775 = vtanh.f32 %v3420_v53 }
 0x75d   :  { %v2776_v57 = vpop.eup %2775 }
 0x75e   :  { %v1673_v58 = vmul.f32 %v2776_v57, %v2774_v54 }
 0x760   :  { %1743 = vmatmul.mubr.f32.vlgmr.msra.gmra.mrb[14].mxu0 %v1673_v58  ;;  %1814 = vmatmul.mubr.f32.vlgmr.msra.gmra.mrb[14].mxu1 %v1673_v58 }
 0x761   :  { %2569 = vmatpush3.bf16.msra.mxu0 %v2568_v14  ;;  %2052 = vmatprep.mubr.msk.f32.mxu0 %vm2873_vm2, %v2871_v1 }
 0x762   :  { %2570 = vmatprep.subr.bf16.mxu0 %v2872_v17 }
 0x765   :  { %2572 = vmatpush3.bf16.msra.mxu0 %v2571_v11 }
 0x766   :  { %2573 = vmatprep.subr.bf16.mxu0 %v2872_v17 }
 0x769   :  { %2575 = vmatpush3.bf16.msra.mxu0 %v2574_v2 }
 0x76a   :  { %2576 = vmatprep.subr.bf16.mxu0 %v2872_v17 }
 0x76d   :  { %2578 = vmatpush3.bf16.msra.mxu0 %v2577_v27 }
 0x76e   :  { %2579 = vmatprep.subr.bf16.mxu0 %v2872_v17 }
 0x771   :  { %2581 = vmatpush3.bf16.msra.mxu0 %v2580_v30 }
 0x772   :  { %2582 = vmatprep.subr.bf16.mxu0 %v2872_v17 }
 0x775   :  { %2584 = vmatpush3.bf16.msra.mxu0 %v2583_v39 }
 0x776   :  { %2585 = vmatprep.subr.bf16.mxu0 %v2872_v17 }
 0x779   :  { %2587 = vmatpush3.bf16.msra.mxu0 %v2586_v43 }
 0x77a   :  { %2588 = vmatprep.subr.bf16.mxu0 %v2872_v17 }
 0x77d   :  { %2590 = vmatpush3.bf16.msra.mxu0 %v2589_v45 }
 0x833   :  { %v1744_v46 = vpop.f32.mrb[14].mxu0  ;;  %v1815_v49 = vpop.f32.mrb[14].mxu1 }
 0x834   :  { %v2605_v50 = vadd.f32 %v1744_v46, %v3152_v25  ;;  %v1746_v55 = vpop.f32.mrb[15].mxu0  ;;  %v1817_v4 = vpop.f32.mrb[15].mxu1  ;;  %v2621_v24 = vadd.f32 %v1815_v49, %v3167_v3 }
 0x835   :  { %v2606_v56 = vadd.f32 %v1746_v55, %v3156_v26  ;;  %v2622_v1 = vadd.f32 %v1817_v4, %v3162_v42 }
 0x836   :  { %v1999_v59 = vmul.f32 -1.442695, %v2605_v50 }
 0x837   :  { %v2000_v9 = vmul.f32 -1.442695, %v2606_v56  ;;  %v2001_v21 = vmul.f32 -1.442695, %v2622_v1 }
 0x838   :  { %2777 = vpow2.f32 %v1999_v59 }
 0x839   :  { %2779 = vpow2.f32 %v2000_v9 }
 0x83a   :  { %2781 = vpow2.f32 %v2001_v21 }
 0x83b   :  { %2783 = vtanh.f32 %v2621_v24 }
 0x842   :  { %v2778_v32 = vpop.eup %2777 }
 0x843   :  { %v2780_v33 = vpop.eup %2779  ;;  %v1827_v36 = vadd.f32 1.0, %v2778_v32 }
 0x844   :  { %v1833_v37 = vadd.f32 1.0, %v2780_v33  ;;  %v2782_v25 = vpop.eup %2781 }
 0x845   :  { %2785 = vrcp.f32 %v1827_v36  ;;  %v2784_v47 = vpop.eup %2783  ;;  %v1840_v52 = vadd.f32 1.0, %v2782_v25 }
 0x846   :  { %2787 = vrcp.f32 %v1833_v37 }
 0x847   :  { %2789 = vrcp.f32 %v1840_v52 }
 0x84f   :  { %v2786_v26 = vpop.eup %2785 }
 0x850   :  { %v2788_v48 = vpop.eup %2787  ;;  %v1844_v51 = vmul.f32 %v2786_v26, %v2784_v47 }
 0x851   :  { %v1843_v60 = vmul.f32 %v2788_v48, %v3420_v53  ;;  %v2790_v3 = vpop.eup %2789 }
 0x853   :  { %v1845_v42 = vadd.f32 %v1844_v51, %v1843_v60 }
 0x855   :  { %2791 = vtanh.f32 %v1845_v42 }
 0x85f   :  { %v2792_v61 = vpop.eup %2791 }
 0x860   :  { %v1847_v0 = vmul.f32 %v2792_v61, %v2790_v3 }
 0x862   :  { %2053 = vmatmul.mubr.f32.vlgmr.msra.gmra.mrb[16].mxu0 %v1847_v0 }
 0x935   :  { %v1937_v15 = vpop.f32.mrb[16].mxu0 }
 0x936   :  { %v1938_v16 = vadd.f32 %v2002_v7, %v1937_v15  ;;  %v2054_v22 = vpop.f32.mrb[17].mxu0 }
 0x938   :  { %1941 = vst [vmem:[#allocation8] sm:$0xff] %v1938_v16 }
 0x939   :  { %2848 = shalt.err (!%p2845_p6)
}
 0x93a   :  { %s2849_s22 = scalar_lea.hbm %s3450_s6, 128 }
 0x93b   :  { %p2850_p7 = scmp.ne.s32.totalorder %s3450_s6, %s2849_s22  ;;  %p2853_p8 = scmp.lt.u32.totalorder %s2849_s22, %s3450_s6 }
 0x93d   :  { %p2855_p9 = pnand %p2853_p8, %p2850_p7 }
 0x93f   :  { %2858 = shalt.err (!%p2855_p9)
}
 0x940   :  { %1951 = dma.vmem_to_hbm [thread:$0]  %s1949_s19, 128, %s3450_s6, [#allocation5]  }
 0x941   :  { %2863 = dma.done.wait [#allocation5], 128  }
 0x942   :  { %2864 = vsyncadd [#allocation5], 4294967168 }
 0x943   :  { %1955 = vsyncpa [#allocation4], 1 }
 0x944   :  { %1956 = vsyncpa [#allocation7], 1 }
 0x945   :  { %1957 = vsyncpa [#allocation5], 1 }

</bundles_post_ra>
